<compile_context>
chip_gen: v5e
topology: v5e:2x2
jax: 0.10.0
libtpu: 0.0.40
codegen_flags: <defaults>
</compile_context>

<pallas_src>
import jax
import jax.numpy as jnp
from jax.experimental import pallas as pl
from jax.experimental.pallas import tpu as pltpu

# ---- small, forward-consistent shapes -------------------------------------
B, S, H = 2, 8, 32          # batch, seq, hidden
N_HEADS, D_HEAD = 4, 8      # H = N_HEADS * D_HEAD
FF = 64                     # FFN intermediate
N_LAYERS = 2
VOCAB = 100
VOCAB_PAD = 104             # word rows padded so pos rows start sublane-aligned
N_CLASSES = 8               # len(attributes) == 8
LN_EPS = 1e-5

# packed per-layer vector rows (width FF = 64)
_R_BQ, _R_BK, _R_BV = 0, 4, 8                 # [NH, D] bias blocks
_R_BO, _R_B1, _R_B2 = 12, 13, 14
_R_LN1G, _R_LN1B, _R_LN2G, _R_LN2B = 15, 16, 17, 18
_VEC_ROWS = 24


def _layernorm(x, g, b):
    mu = jnp.mean(x, axis=-1, keepdims=True)
    var = jnp.mean((x - mu) ** 2, axis=-1, keepdims=True)
    return (x - mu) * jax.lax.rsqrt(var + LN_EPS) * g + b


def _bf16(x):
    return x.astype(jnp.bfloat16)


# ---- kernel: one (batch, layer) grid step ----------------------------------
def encoder_kernel(ids_ref,                     # SMEM [B, S] int32 (prefetched)
                   mask_ref, tables_ref,        # VMEM, full arrays
                   wqkv_ref, wstack_ref, vecl_ref,   # per-layer blocks
                   vecg_ref, whead_ref,         # VMEM, full arrays
                   o_ref,                       # [1, 1, N_CLASSES]
                   x_scr):                      # VMEM scratch [S, H] f32
    f32 = jnp.float32
    b = pl.program_id(0)
    l = pl.program_id(1)

    # ---- embeddings (first layer step only): row gather + pos + LayerNorm --
    @pl.when(l == 0)
    def _():
        for s in range(S):                      # static unroll, S rows
            idx = ids_ref[b, s]                 # scalar from SMEM
            x_scr[pl.ds(s, 1), :] = tables_ref[pl.ds(idx, 1), :]
        emb = x_scr[...] + tables_ref[pl.ds(VOCAB_PAD, S), :]      # + pos_emb
        x_scr[...] = _layernorm(emb, vecg_ref[0:1, 0:H], vecg_ref[1:2, 0:H])

    # ---- one encoder layer (this layer's weights streamed via BlockSpec) ---
    x = x_scr[...]                              # [S, H] f32, VMEM resident
    mask_row = mask_ref[pl.ds(b, 1), :]         # [1, S]
    add_mask = (1.0 - mask_row) * (-1e9)        # additive key mask

    # head-major QKV projections: batched over heads, contraction K = H
    xb = jnp.broadcast_to(_bf16(x)[None], (N_HEADS, S, H))        # [NH, S, H]
    wq = wqkv_ref[0, 0:N_HEADS, :, :]           # [NH, H, D] (1/sqrt(d) folded)
    wk = wqkv_ref[0, N_HEADS:2 * N_HEADS, :, :]
    wv = wqkv_ref[0, 2 * N_HEADS:3 * N_HEADS, :, :]
    bq = vecl_ref[0, _R_BQ:_R_BQ + N_HEADS, 0:D_HEAD][:, None, :]  # [NH,1,D]
    bk = vecl_ref[0, _R_BK:_R_BK + N_HEADS, 0:D_HEAD][:, None, :]
    bv = vecl_ref[0, _R_BV:_R_BV + N_HEADS, 0:D_HEAD][:, None, :]
    q = jnp.einsum('nsh,nhd->nsd', xb, wq, preferred_element_type=f32) + bq
    k = jnp.einsum('nsh,nhd->nsd', xb, wk, preferred_element_type=f32) + bk
    v = jnp.einsum('nsh,nhd->nsd', xb, wv, preferred_element_type=f32) + bv

    s_att = jnp.einsum('nqd,nkd->nqk', _bf16(q), _bf16(k),
                       preferred_element_type=f32) + add_mask[None]
    s_att = s_att - jnp.max(s_att, axis=-1, keepdims=True)         # stable
    p = jnp.exp(s_att)
    p = p * pl.reciprocal(jnp.sum(p, axis=-1, keepdims=True), approx=True)
    ctx = jnp.einsum('nqk,nkd->nqd', _bf16(p), _bf16(v),
                     preferred_element_type=f32)                   # [NH, S, D]

    # concat heads back to [S, H]; ONE output-projection matmul (K = H)
    ctx2d = jnp.concatenate([ctx[h] for h in range(N_HEADS)], axis=-1)
    wo = wstack_ref[0, 0, 0:H, 0:H]
    attn = jnp.dot(_bf16(ctx2d), wo, preferred_element_type=f32) \
        + vecl_ref[0, _R_BO:_R_BO + 1, 0:H]
    x = _layernorm(x + attn,
                   vecl_ref[0, _R_LN1G:_R_LN1G + 1, 0:H],
                   vecl_ref[0, _R_LN1B:_R_LN1B + 1, 0:H])

    # feed-forward: plain 2-D [S, H] matmuls
    w1 = wstack_ref[0, 1, 0:H, :]               # [H, FF]
    w2 = wstack_ref[0, 2, :, 0:H]               # [FF, H]
    h1 = jax.nn.gelu(
        jnp.dot(_bf16(x), w1, preferred_element_type=f32)
        + vecl_ref[0, _R_B1:_R_B1 + 1, :], approximate=True)
    ffn = jnp.dot(_bf16(h1), w2, preferred_element_type=f32) \
        + vecl_ref[0, _R_B2:_R_B2 + 1, 0:H]
    x = _layernorm(x + ffn,
                   vecl_ref[0, _R_LN2G:_R_LN2G + 1, 0:H],
                   vecl_ref[0, _R_LN2B:_R_LN2B + 1, 0:H])
    x_scr[...] = x                               # carry to next layer step

    # ---- classification head (last layer step only) ------------------------
    @pl.when(l == N_LAYERS - 1)
    def _():
        # torch.mean(last_hidden_state, 1); dropout = identity in eval mode
        pooled = jnp.sum(x, axis=0, keepdims=True) * (1.0 / S)     # [1, H]
        wh = whead_ref[0, :, 0:H]
        wc = whead_ref[1, :, 0:N_CLASSES]
        hdn = jnp.maximum(
            jnp.dot(_bf16(pooled), wh, preferred_element_type=f32)
            + vecg_ref[2:3, 0:H], 0.0)                             # h_layer+ReLU
        logits = jnp.dot(_bf16(hdn), wc, preferred_element_type=f32) \
            + vecg_ref[3:4, 0:N_CLASSES]                           # c_head
        o_ref[...] = logits[None]


# ---- deterministic parameter init (packed / stacked layout) -----------------
def init_params(key):
    def normal(k, shape):
        return 0.02 * jax.random.normal(k, shape, dtype=jnp.float32)

    bf16 = jnp.bfloat16
    scale = D_HEAD ** -0.5

    word_emb = normal(jax.random.fold_in(key, 0), (VOCAB, H))
    word_emb = jnp.pad(word_emb, ((0, VOCAB_PAD - VOCAB), (0, 0)))
    pos_emb = normal(jax.random.fold_in(key, 1), (S, H))
    tables = jnp.concatenate([word_emb, pos_emb], axis=0)      # [VOCAB_PAD+S, H]

    def head_major(w):                   # [H, H] -> [NH, H, D]
        return w.reshape(H, N_HEADS, D_HEAD).transpose(1, 0, 2)

    wqkv_l, wstack_l, vecl_l = [], [], []
    for l in range(N_LAYERS):
        kl = jax.random.fold_in(key, 100 + l)
        wq = normal(jax.random.fold_in(kl, 0), (H, H)) * scale   # scale folded
        wk = normal(jax.random.fold_in(kl, 1), (H, H))
        wv = normal(jax.random.fold_in(kl, 2), (H, H))
        # TODO(synk): when loading a real checkpoint, fold `scale` into bq too.
        bq = jnp.zeros((H,), jnp.float32) * scale
        bk = jnp.zeros((H,), jnp.float32)
        bv = jnp.zeros((H,), jnp.float32)
        wo = normal(jax.random.fold_in(kl, 3), (H, H))
        bo = jnp.zeros((H,), jnp.float32)
        w1 = normal(jax.random.fold_in(kl, 4), (H, FF))
        b1 = jnp.zeros((FF,), jnp.float32)
        w2 = normal(jax.random.fold_in(kl, 5), (FF, H))
        b2 = jnp.zeros((H,), jnp.float32)
        ln1g, ln1b = jnp.ones((H,), jnp.float32), jnp.zeros((H,), jnp.float32)
        ln2g, ln2b = jnp.ones((H,), jnp.float32), jnp.zeros((H,), jnp.float32)

        wqkv_l.append(jnp.concatenate(
            [head_major(wq), head_major(wk), head_major(wv)], axis=0))

        ws = jnp.zeros((3, FF, FF), jnp.float32)
        ws = ws.at[0, :H, :H].set(wo).at[1, :H, :].set(w1).at[2, :, :H].set(w2)
        wstack_l.append(ws)

        vec = jnp.zeros((_VEC_ROWS, FF), jnp.float32)
        vec = vec.at[_R_BQ:_R_BQ + N_HEADS, :D_HEAD].set(
            bq.reshape(N_HEADS, D_HEAD))
        vec = vec.at[_R_BK:_R_BK + N_HEADS, :D_HEAD].set(
            bk.reshape(N_HEADS, D_HEAD))
        vec = vec.at[_R_BV:_R_BV + N_HEADS, :D_HEAD].set(
            bv.reshape(N_HEADS, D_HEAD))
        vec = vec.at[_R_BO, :H].set(bo).at[_R_B1, :].set(b1).at[_R_B2, :H].set(b2)
        vec = vec.at[_R_LN1G, :H].set(ln1g).at[_R_LN1B, :H].set(ln1b)
        vec = vec.at[_R_LN2G, :H].set(ln2g).at[_R_LN2B, :H].set(ln2b)
        vecl_l.append(vec)

    wh = normal(jax.random.fold_in(key, 2), (H, H))
    wc = normal(jax.random.fold_in(key, 3), (H, N_CLASSES))
    w_head = jnp.zeros((2, H, FF), jnp.float32)
    w_head = w_head.at[0, :, :H].set(wh).at[1, :, :N_CLASSES].set(wc)

    vec_global = jnp.zeros((4, FF), jnp.float32)
    vec_global = vec_global.at[0, :H].set(jnp.ones((H,), jnp.float32))  # emb LN g
    # row 1: emb LN beta (zeros); row 2: bh (zeros); row 3: bc (zeros)

    return {
        'tables': tables,                               # [VOCAB_PAD+S, H] f32
        'wqkv': jnp.stack(wqkv_l).astype(bf16),         # [L, 3*NH, H, D] bf16
        'wstack': jnp.stack(wstack_l).astype(bf16),     # [L, 3, FF, FF]  bf16
        'vec_layer': jnp.stack(vecl_l),                 # [L, 24, FF]     f32
        'vec_global': vec_global,                       # [4, FF]         f32
        'w_head': w_head.astype(bf16),                  # [2, H, FF]      bf16
    }


# ---- forward pass: one pallas_call, grid = (batch, layer) -------------------
def forward(params, input_ids, attention_mask):
    ids = input_ids.astype(jnp.int32)
    mask = attention_mask.astype(jnp.float32)
    wqkv, wstack, vecl = params['wqkv'], params['wstack'], params['vec_layer']

    def full_spec(arr):
        zeros = (0,) * arr.ndim
        return pl.BlockSpec(arr.shape, lambda b, l, ids_r, _z=zeros: _z)

    grid_spec = pltpu.PrefetchScalarGridSpec(
        num_scalar_prefetch=1,                  # input_ids -> SMEM
        grid=(B, N_LAYERS),
        in_specs=[
            full_spec(mask),
            full_spec(params['tables']),
            pl.BlockSpec((1,) + wqkv.shape[1:],
                         lambda b, l, ids_r: (l, 0, 0, 0)),
            pl.BlockSpec((1,) + wstack.shape[1:],
                         lambda b, l, ids_r: (l, 0, 0, 0)),
            pl.BlockSpec((1,) + vecl.shape[1:],
                         lambda b, l, ids_r: (l, 0, 0)),
            full_spec(params['vec_global']),
            full_spec(params['w_head']),
        ],
        out_specs=pl.BlockSpec((1, 1, N_CLASSES), lambda b, l, ids_r: (b, 0, 0)),
        scratch_shapes=[pltpu.VMEM((S, H), jnp.float32)],
    )
    out = pl.pallas_call(
        encoder_kernel,
        grid_spec=grid_spec,
        out_shape=jax.ShapeDtypeStruct((B, 1, N_CLASSES), jnp.float32),
        compiler_params=pltpu.CompilerParams(
            dimension_semantics=("parallel", "arbitrary")),
    )(ids, mask, params['tables'], wqkv, wstack, vecl,
      params['vec_global'], params['w_head'])
    return out.reshape(B, N_CLASSES)


if __name__ == "__main__":
    key = jax.random.PRNGKey(0)
    params = init_params(key)

    input_ids = jax.random.randint(jax.random.fold_in(key, 999),
                                   (B, S), 0, VOCAB, dtype=jnp.int32)
    attention_mask = jnp.ones((B, S), dtype=jnp.int32).at[1, 6:].set(0)

    logits = forward(params, input_ids, attention_mask)
    logits = jax.block_until_ready(logits)
    assert logits.shape == (B, N_CLASSES)
    assert bool(jnp.all(jnp.isfinite(logits)))
    print("KERNEL_OK")
</pallas_src>

<mosaic_0001>
module attributes {stable_mosaic.version = 11 : i64} {
  func.func @encoder_kernel(%arg0: i32, %arg1: i32, %arg2: memref<2x8xi32, #tpu.memory_space<smem>>, %arg3: memref<2x8xf32, #tpu.memory_space<vmem>>, %arg4: memref<112x32xf32, #tpu.memory_space<vmem>>, %arg5: memref<1x12x32x8xbf16, #tpu.memory_space<vmem>>, %arg6: memref<1x3x64x64xbf16, #tpu.memory_space<vmem>>, %arg7: memref<1x24x64xf32, #tpu.memory_space<vmem>>, %arg8: memref<4x64xf32, #tpu.memory_space<vmem>>, %arg9: memref<2x32x64xbf16, #tpu.memory_space<vmem>>, %arg10: memref<1x1x8xf32, #tpu.memory_space<vmem>>, %arg11: memref<8x32xf32, #tpu.memory_space<vmem>>) attributes {dimension_semantics = [#tpu.dimension_semantics<parallel>, #tpu.dimension_semantics<arbitrary>], iteration_bounds = array<i64: 2, 2>, scalar_prefetch = 1 : i64, scratch_operands = 1 : i64, tpu.core_type = #tpu.core_type<tc>, window_params = [{pipeline_mode = #tpu.pipeline_mode<synchronous>, transform_indices = @transform_0, window_bounds = array<i64: 2, 8>}, {pipeline_mode = #tpu.pipeline_mode<synchronous>, transform_indices = @transform_1, window_bounds = array<i64: 112, 32>}, {transform_indices = @transform_2, window_bounds = array<i64: 1, 12, 32, 8>}, {transform_indices = @transform_3, window_bounds = array<i64: 1, 3, 64, 64>}, {transform_indices = @transform_4, window_bounds = array<i64: 1, 24, 64>}, {pipeline_mode = #tpu.pipeline_mode<synchronous>, transform_indices = @transform_5, window_bounds = array<i64: 4, 64>}, {pipeline_mode = #tpu.pipeline_mode<synchronous>, transform_indices = @transform_6, window_bounds = array<i64: 2, 32, 64>}, {transform_indices = @transform_7, window_bounds = array<i64: 1, 1, 8>}]} {
    %c0_i32 = arith.constant 0 : i32
    %0 = arith.cmpi eq, %arg1, %c0_i32 : i32
    %1 = arith.extui %0 : i1 to i32
    %c0_i32_0 = arith.constant 0 : i32
    %2 = arith.cmpi ne, %1, %c0_i32_0 : i32
    scf.if %2 {
      %161 = arith.index_cast %arg0 : i32 to index
      %c0_74 = arith.constant 0 : index
      %162 = memref.load %arg2[%161, %c0_74] : memref<2x8xi32, #tpu.memory_space<smem>>
      %163 = arith.index_cast %162 : i32 to index
      %c0_75 = arith.constant 0 : index
      %164 = vector.load %arg4[%163, %c0_75] : memref<112x32xf32, #tpu.memory_space<vmem>>, vector<1x32xf32>
      %c0_76 = arith.constant 0 : index
      %c0_77 = arith.constant 0 : index
      %165 = vector.load %arg11[%c0_76, %c0_77] : memref<8x32xf32, #tpu.memory_space<vmem>>, vector<1x32xf32>
      tpu.vector_store %arg11[%c0_76, %c0_77], %164 {strides = array<i32>} : memref<8x32xf32, #tpu.memory_space<vmem>>, vector<1x32xf32>,
      %166 = arith.index_cast %arg0 : i32 to index
      %c1_78 = arith.constant 1 : index
      %167 = memref.load %arg2[%166, %c1_78] : memref<2x8xi32, #tpu.memory_space<smem>>
      %168 = arith.index_cast %167 : i32 to index
      %c0_79 = arith.constant 0 : index
      %169 = vector.load %arg4[%168, %c0_79] : memref<112x32xf32, #tpu.memory_space<vmem>>, vector<1x32xf32>
      %c1_80 = arith.constant 1 : index
      %c0_81 = arith.constant 0 : index
      %170 = vector.load %arg11[%c1_80, %c0_81] : memref<8x32xf32, #tpu.memory_space<vmem>>, vector<1x32xf32>
      tpu.vector_store %arg11[%c1_80, %c0_81], %169 {strides = array<i32>} : memref<8x32xf32, #tpu.memory_space<vmem>>, vector<1x32xf32>,
      %171 = arith.index_cast %arg0 : i32 to index
      %c2_82 = arith.constant 2 : index
      %172 = memref.load %arg2[%171, %c2_82] : memref<2x8xi32, #tpu.memory_space<smem>>
      %173 = arith.index_cast %172 : i32 to index
      %c0_83 = arith.constant 0 : index
      %174 = vector.load %arg4[%173, %c0_83] : memref<112x32xf32, #tpu.memory_space<vmem>>, vector<1x32xf32>
      %c2_84 = arith.constant 2 : index
      %c0_85 = arith.constant 0 : index
      %175 = vector.load %arg11[%c2_84, %c0_85] : memref<8x32xf32, #tpu.memory_space<vmem>>, vector<1x32xf32>
      tpu.vector_store %arg11[%c2_84, %c0_85], %174 {strides = array<i32>} : memref<8x32xf32, #tpu.memory_space<vmem>>, vector<1x32xf32>,
      %176 = arith.index_cast %arg0 : i32 to index
      %c3 = arith.constant 3 : index
      %177 = memref.load %arg2[%176, %c3] : memref<2x8xi32, #tpu.memory_space<smem>>
      %178 = arith.index_cast %177 : i32 to index
      %c0_86 = arith.constant 0 : index
      %179 = vector.load %arg4[%178, %c0_86] : memref<112x32xf32, #tpu.memory_space<vmem>>, vector<1x32xf32>
      %c3_87 = arith.constant 3 : index
      %c0_88 = arith.constant 0 : index
      %180 = vector.load %arg11[%c3_87, %c0_88] : memref<8x32xf32, #tpu.memory_space<vmem>>, vector<1x32xf32>
      tpu.vector_store %arg11[%c3_87, %c0_88], %179 {strides = array<i32>} : memref<8x32xf32, #tpu.memory_space<vmem>>, vector<1x32xf32>,
      %181 = arith.index_cast %arg0 : i32 to index
      %c4_89 = arith.constant 4 : index
      %182 = memref.load %arg2[%181, %c4_89] : memref<2x8xi32, #tpu.memory_space<smem>>
      %183 = arith.index_cast %182 : i32 to index
      %c0_90 = arith.constant 0 : index
      %184 = vector.load %arg4[%183, %c0_90] : memref<112x32xf32, #tpu.memory_space<vmem>>, vector<1x32xf32>
      %c4_91 = arith.constant 4 : index
      %c0_92 = arith.constant 0 : index
      %185 = vector.load %arg11[%c4_91, %c0_92] : memref<8x32xf32, #tpu.memory_space<vmem>>, vector<1x32xf32>
      tpu.vector_store %arg11[%c4_91, %c0_92], %184 {strides = array<i32>} : memref<8x32xf32, #tpu.memory_space<vmem>>, vector<1x32xf32>,
      %186 = arith.index_cast %arg0 : i32 to index
      %c5 = arith.constant 5 : index
      %187 = memref.load %arg2[%186, %c5] : memref<2x8xi32, #tpu.memory_space<smem>>
      %188 = arith.index_cast %187 : i32 to index
      %c0_93 = arith.constant 0 : index
      %189 = vector.load %arg4[%188, %c0_93] : memref<112x32xf32, #tpu.memory_space<vmem>>, vector<1x32xf32>
      %c5_94 = arith.constant 5 : index
      %c0_95 = arith.constant 0 : index
      %190 = vector.load %arg11[%c5_94, %c0_95] : memref<8x32xf32, #tpu.memory_space<vmem>>, vector<1x32xf32>
      tpu.vector_store %arg11[%c5_94, %c0_95], %189 {strides = array<i32>} : memref<8x32xf32, #tpu.memory_space<vmem>>, vector<1x32xf32>,
      %191 = arith.index_cast %arg0 : i32 to index
      %c6 = arith.constant 6 : index
      %192 = memref.load %arg2[%191, %c6] : memref<2x8xi32, #tpu.memory_space<smem>>
      %193 = arith.index_cast %192 : i32 to index
      %c0_96 = arith.constant 0 : index
      %194 = vector.load %arg4[%193, %c0_96] : memref<112x32xf32, #tpu.memory_space<vmem>>, vector<1x32xf32>
      %c6_97 = arith.constant 6 : index
      %c0_98 = arith.constant 0 : index
      %195 = vector.load %arg11[%c6_97, %c0_98] : memref<8x32xf32, #tpu.memory_space<vmem>>, vector<1x32xf32>
      tpu.vector_store %arg11[%c6_97, %c0_98], %194 {strides = array<i32>} : memref<8x32xf32, #tpu.memory_space<vmem>>, vector<1x32xf32>,
      %196 = arith.index_cast %arg0 : i32 to index
      %c7 = arith.constant 7 : index
      %197 = memref.load %arg2[%196, %c7] : memref<2x8xi32, #tpu.memory_space<smem>>
      %198 = arith.index_cast %197 : i32 to index
      %c0_99 = arith.constant 0 : index
      %199 = vector.load %arg4[%198, %c0_99] : memref<112x32xf32, #tpu.memory_space<vmem>>, vector<1x32xf32>
      %c7_100 = arith.constant 7 : index
      %c0_101 = arith.constant 0 : index
      %200 = vector.load %arg11[%c7_100, %c0_101] : memref<8x32xf32, #tpu.memory_space<vmem>>, vector<1x32xf32>
      tpu.vector_store %arg11[%c7_100, %c0_101], %199 {strides = array<i32>} : memref<8x32xf32, #tpu.memory_space<vmem>>, vector<1x32xf32>,
      %c0_102 = arith.constant 0 : index
      %c0_103 = arith.constant 0 : index
      %201 = vector.load %arg11[%c0_102, %c0_103] : memref<8x32xf32, #tpu.memory_space<vmem>>, vector<8x32xf32>
      %c104 = arith.constant 104 : index
      %c0_104 = arith.constant 0 : index
      %202 = vector.load %arg4[%c104, %c0_104] : memref<112x32xf32, #tpu.memory_space<vmem>>, vector<8x32xf32>
      %203 = arith.addf %201, %202 : vector<8x32xf32>
      %c0_105 = arith.constant 0 : index
      %c0_106 = arith.constant 0 : index
      %204 = vector.load %arg8[%c0_105, %c0_106] : memref<4x64xf32, #tpu.memory_space<vmem>>, vector<1x32xf32>
      %c1_107 = arith.constant 1 : index
      %c0_108 = arith.constant 0 : index
      %205 = vector.load %arg8[%c1_107, %c0_108] : memref<4x64xf32, #tpu.memory_space<vmem>>, vector<1x32xf32>
      %cst_109 = arith.constant dense<0.000000e+00> : vector<8xf32>
      %206 = vector.multi_reduction <add>, %203, %cst_109 [1] : vector<8x32xf32> to vector<8xf32>
      %207 = vector.shape_cast %206 : vector<8xf32> to vector<8x1xf32>
      %cst_110 = arith.constant 3.200000e+01 : f32
      %208 = vector.broadcast %cst_110 : f32 to vector<8x1xf32>
      %209 = arith.divf %207, %208 : vector<8x1xf32>
      %210 = vector.broadcast %209 : vector<8x1xf32> to vector<8x32xf32>
      %211 = arith.subf %203, %210 : vector<8x32xf32>
      %212 = arith.mulf %211, %211 : vector<8x32xf32>
      %cst_111 = arith.constant dense<0.000000e+00> : vector<8xf32>
      %213 = vector.multi_reduction <add>, %212, %cst_111 [1] : vector<8x32xf32> to vector<8xf32>
      %214 = vector.shape_cast %213 : vector<8xf32> to vector<8x1xf32>
      %cst_112 = arith.constant 3.200000e+01 : f32
      %215 = vector.broadcast %cst_112 : f32 to vector<8x1xf32>
      %216 = arith.divf %214, %215 : vector<8x1xf32>
      %217 = vector.broadcast %209 : vector<8x1xf32> to vector<8x32xf32>
      %218 = arith.subf %203, %217 : vector<8x32xf32>
      %cst_113 = arith.constant 9.99999974E-6 : f32
      %219 = vector.broadcast %cst_113 : f32 to vector<8x1xf32>
      %220 = arith.addf %216, %219 : vector<8x1xf32>
      %221 = math.rsqrt %220 : vector<8x1xf32>
      %222 = vector.broadcast %221 : vector<8x1xf32> to vector<8x32xf32>
      %223 = arith.mulf %218, %222 : vector<8x32xf32>
      %224 = vector.broadcast %204 : vector<1x32xf32> to vector<8x32xf32>
      %225 = arith.mulf %223, %224 : vector<8x32xf32>
      %226 = vector.broadcast %205 : vector<1x32xf32> to vector<8x32xf32>
      %227 = arith.addf %225, %226 : vector<8x32xf32>
      %c0_114 = arith.constant 0 : index
      %c0_115 = arith.constant 0 : index
      %228 = vector.load %arg11[%c0_114, %c0_115] : memref<8x32xf32, #tpu.memory_space<vmem>>, vector<8x32xf32>
      tpu.vector_store %arg11[%c0_114, %c0_115], %227 {strides = array<i32>} : memref<8x32xf32, #tpu.memory_space<vmem>>, vector<8x32xf32>,
    } else {
    }
    %c0 = arith.constant 0 : index
    %c0_1 = arith.constant 0 : index
    %3 = vector.load %arg11[%c0, %c0_1] : memref<8x32xf32, #tpu.memory_space<vmem>>, vector<8x32xf32>
    %4 = arith.index_cast %arg0 : i32 to index
    %c0_2 = arith.constant 0 : index
    %5 = vector.load %arg3[%4, %c0_2] : memref<2x8xf32, #tpu.memory_space<vmem>>, vector<1x8xf32>
    %cst = arith.constant 1.000000e+00 : f32
    %6 = vector.broadcast %cst : f32 to vector<1x8xf32>
    %7 = arith.subf %6, %5 : vector<1x8xf32>
    %cst_3 = arith.constant -1.000000e+09 : f32
    %8 = vector.broadcast %cst_3 : f32 to vector<1x8xf32>
    %9 = arith.mulf %7, %8 : vector<1x8xf32>
    %10 = arith.truncf %3 : vector<8x32xf32> to vector<8x32xbf16>
    %11 = vector.shape_cast %10 : vector<8x32xbf16> to vector<1x8x32xbf16>
    %12 = vector.shape_cast %11 : vector<1x8x32xbf16> to vector<1x8x32xbf16>
    %13 = vector.broadcast %12 : vector<1x8x32xbf16> to vector<4x8x32xbf16>
    %c0_4 = arith.constant 0 : index
    %c0_5 = arith.constant 0 : index
    %c0_6 = arith.constant 0 : index
    %c0_7 = arith.constant 0 : index
    %14 = vector.load %arg5[%c0_4, %c0_5, %c0_6, %c0_7] : memref<1x12x32x8xbf16, #tpu.memory_space<vmem>>, vector<1x4x32x8xbf16>
    %15 = vector.shape_cast %14 : vector<1x4x32x8xbf16> to vector<4x32x8xbf16>
    %c0_8 = arith.constant 0 : index
    %c4 = arith.constant 4 : index
    %c0_9 = arith.constant 0 : index
    %c0_10 = arith.constant 0 : index
    %16 = vector.load %arg5[%c0_8, %c4, %c0_9, %c0_10] : memref<1x12x32x8xbf16, #tpu.memory_space<vmem>>, vector<1x4x32x8xbf16>
    %17 = vector.shape_cast %16 : vector<1x4x32x8xbf16> to vector<4x32x8xbf16>
    %c0_11 = arith.constant 0 : index
    %c8 = arith.constant 8 : index
    %c0_12 = arith.constant 0 : index
    %c0_13 = arith.constant 0 : index
    %18 = vector.load %arg5[%c0_11, %c8, %c0_12, %c0_13] : memref<1x12x32x8xbf16, #tpu.memory_space<vmem>>, vector<1x4x32x8xbf16>
    %19 = vector.shape_cast %18 : vector<1x4x32x8xbf16> to vector<4x32x8xbf16>
    %c0_14 = arith.constant 0 : index
    %c0_15 = arith.constant 0 : index
    %c0_16 = arith.constant 0 : index
    %20 = vector.load %arg7[%c0_14, %c0_15, %c0_16] : memref<1x24x64xf32, #tpu.memory_space<vmem>>, vector<1x4x8xf32>
    %21 = vector.shape_cast %20 : vector<1x4x8xf32> to vector<4x8xf32>
    %22 = vector.shape_cast %21 : vector<4x8xf32> to vector<4x1x8xf32>
    %c0_17 = arith.constant 0 : index
    %c4_18 = arith.constant 4 : index
    %c0_19 = arith.constant 0 : index
    %23 = vector.load %arg7[%c0_17, %c4_18, %c0_19] : memref<1x24x64xf32, #tpu.memory_space<vmem>>, vector<1x4x8xf32>
    %24 = vector.shape_cast %23 : vector<1x4x8xf32> to vector<4x8xf32>
    %25 = vector.shape_cast %24 : vector<4x8xf32> to vector<4x1x8xf32>
    %c0_20 = arith.constant 0 : index
    %c8_21 = arith.constant 8 : index
    %c0_22 = arith.constant 0 : index
    %26 = vector.load %arg7[%c0_20, %c8_21, %c0_22] : memref<1x24x64xf32, #tpu.memory_space<vmem>>, vector<1x4x8xf32>
    %27 = vector.shape_cast %26 : vector<1x4x8xf32> to vector<4x8xf32>
    %28 = vector.shape_cast %27 : vector<4x8xf32> to vector<4x1x8xf32>
    "tpu.trace_start"() <{level = 10 : i32, message = "nsh,nhd->nsd"}> : () -> ()
    %cst_23 = arith.constant dense<0.000000e+00> : vector<4x8x8xf32>
    %29 = tpu.matmul %13, %15, %cst_23 {dimension_numbers = #tpu.dot_dimension_numbers<[2], [1], [1], [2], [0, 0, 0, 1, 1, 2], [0], [0]>} : vector<4x8x32xbf16>, vector<4x32x8xbf16>, vector<4x8x8xf32> -> vector<4x8x8xf32>
    "tpu.trace_stop"() : () -> ()
    %30 = vector.broadcast %22 : vector<4x1x8xf32> to vector<4x8x8xf32>
    %31 = arith.addf %29, %30 : vector<4x8x8xf32>
    "tpu.trace_start"() <{level = 10 : i32, message = "nsh,nhd->nsd"}> : () -> ()
    %cst_24 = arith.constant dense<0.000000e+00> : vector<4x8x8xf32>
    %32 = tpu.matmul %13, %17, %cst_24 {dimension_numbers = #tpu.dot_dimension_numbers<[2], [1], [1], [2], [0, 0, 0, 1, 1, 2], [0], [0]>} : vector<4x8x32xbf16>, vector<4x32x8xbf16>, vector<4x8x8xf32> -> vector<4x8x8xf32>
    "tpu.trace_stop"() : () -> ()
    %33 = vector.broadcast %25 : vector<4x1x8xf32> to vector<4x8x8xf32>
    %34 = arith.addf %32, %33 : vector<4x8x8xf32>
    "tpu.trace_start"() <{level = 10 : i32, message = "nsh,nhd->nsd"}> : () -> ()
    %cst_25 = arith.constant dense<0.000000e+00> : vector<4x8x8xf32>
    %35 = tpu.matmul %13, %19, %cst_25 {dimension_numbers = #tpu.dot_dimension_numbers<[2], [1], [1], [2], [0, 0, 0, 1, 1, 2], [0], [0]>} : vector<4x8x32xbf16>, vector<4x32x8xbf16>, vector<4x8x8xf32> -> vector<4x8x8xf32>
    "tpu.trace_stop"() : () -> ()
    %36 = vector.broadcast %28 : vector<4x1x8xf32> to vector<4x8x8xf32>
    %37 = arith.addf %35, %36 : vector<4x8x8xf32>
    %38 = arith.truncf %31 : vector<4x8x8xf32> to vector<4x8x8xbf16>
    %39 = arith.truncf %34 : vector<4x8x8xf32> to vector<4x8x8xbf16>
    "tpu.trace_start"() <{level = 10 : i32, message = "nqd,nkd->nqk"}> : () -> ()
    %cst_26 = arith.constant dense<0.000000e+00> : vector<4x8x8xf32>
    %40 = tpu.matmul %38, %39, %cst_26 {dimension_numbers = #tpu.dot_dimension_numbers<[2], [2], [1], [1], [0, 0, 0, 1, 1, 1], [0], [0]>} : vector<4x8x8xbf16>, vector<4x8x8xbf16>, vector<4x8x8xf32> -> vector<4x8x8xf32>
    "tpu.trace_stop"() : () -> ()
    %41 = vector.shape_cast %9 : vector<1x8xf32> to vector<1x1x8xf32>
    %42 = vector.broadcast %41 : vector<1x1x8xf32> to vector<4x8x8xf32>
    %43 = arith.addf %40, %42 : vector<4x8x8xf32>
    %cst_27 = arith.constant dense<0xFF800000> : vector<4x8xf32>
    %44 = vector.multi_reduction <maximumf>, %43, %cst_27 [2] : vector<4x8x8xf32> to vector<4x8xf32>
    %45 = vector.shape_cast %44 : vector<4x8xf32> to vector<4x8x1xf32>
    %46 = vector.broadcast %45 : vector<4x8x1xf32> to vector<4x8x8xf32>
    %47 = arith.subf %43, %46 : vector<4x8x8xf32>
    %48 = math.exp %47 : vector<4x8x8xf32>
    %cst_28 = arith.constant dense<0.000000e+00> : vector<4x8xf32>
    %49 = vector.multi_reduction <add>, %48, %cst_28 [2] : vector<4x8x8xf32> to vector<4x8xf32>
    %50 = vector.shape_cast %49 : vector<4x8xf32> to vector<4x8x1xf32>
    %51 = tpu.reciprocal %50 {approx = true} : vector<4x8x1xf32> -> vector<4x8x1xf32>
    %52 = vector.broadcast %51 : vector<4x8x1xf32> to vector<4x8x8xf32>
    %53 = arith.mulf %48, %52 : vector<4x8x8xf32>
    %54 = arith.truncf %53 : vector<4x8x8xf32> to vector<4x8x8xbf16>
    %55 = arith.truncf %37 : vector<4x8x8xf32> to vector<4x8x8xbf16>
    "tpu.trace_start"() <{level = 10 : i32, message = "nqk,nkd->nqd"}> : () -> ()
    %cst_29 = arith.constant dense<0.000000e+00> : vector<4x8x8xf32>
    %56 = tpu.matmul %54, %55, %cst_29 {dimension_numbers = #tpu.dot_dimension_numbers<[2], [1], [1], [2], [0, 0, 0, 1, 1, 2], [0], [0]>} : vector<4x8x8xbf16>, vector<4x8x8xbf16>, vector<4x8x8xf32> -> vector<4x8x8xf32>
    "tpu.trace_stop"() : () -> ()
    %57 = vector.extract_strided_slice %56 {offsets = [0, 0, 0], sizes = [1, 8, 8], strides = [1, 1, 1]} : vector<4x8x8xf32> to vector<1x8x8xf32>
    %58 = vector.shape_cast %57 : vector<1x8x8xf32> to vector<8x8xf32>
    %59 = vector.extract_strided_slice %56 {offsets = [1, 0, 0], sizes = [1, 8, 8], strides = [1, 1, 1]} : vector<4x8x8xf32> to vector<1x8x8xf32>
    %60 = vector.shape_cast %59 : vector<1x8x8xf32> to vector<8x8xf32>
    %61 = vector.extract_strided_slice %56 {offsets = [2, 0, 0], sizes = [1, 8, 8], strides = [1, 1, 1]} : vector<4x8x8xf32> to vector<1x8x8xf32>
    %62 = vector.shape_cast %61 : vector<1x8x8xf32> to vector<8x8xf32>
    %63 = vector.extract_strided_slice %56 {offsets = [3, 0, 0], sizes = [1, 8, 8], strides = [1, 1, 1]} : vector<4x8x8xf32> to vector<1x8x8xf32>
    %64 = vector.shape_cast %63 : vector<1x8x8xf32> to vector<8x8xf32>
    %65 = tpu.concatenate %58, %60, %62, %64 in 1 : vector<8x8xf32>, vector<8x8xf32>, vector<8x8xf32>, vector<8x8xf32> -> vector<8x32xf32>
    %c0_30 = arith.constant 0 : index
    %c0_31 = arith.constant 0 : index
    %c0_32 = arith.constant 0 : index
    %c0_33 = arith.constant 0 : index
    %66 = vector.load %arg6[%c0_30, %c0_31, %c0_32, %c0_33] : memref<1x3x64x64xbf16, #tpu.memory_space<vmem>>, vector<1x1x32x32xbf16>
    %67 = vector.shape_cast %66 : vector<1x1x32x32xbf16> to vector<32x32xbf16>
    %68 = arith.truncf %65 : vector<8x32xf32> to vector<8x32xbf16>
    %cst_34 = arith.constant dense<0.000000e+00> : vector<8x32xf32>
    %69 = tpu.matmul %68, %67, %cst_34 {dimension_numbers = #tpu.dot_dimension_numbers<[1], [0], [0], [1], [0, 0, 1, 1], [], []>} : vector<8x32xbf16>, vector<32x32xbf16>, vector<8x32xf32> -> vector<8x32xf32>
    %c0_35 = arith.constant 0 : index
    %c12 = arith.constant 12 : index
    %c0_36 = arith.constant 0 : index
    %70 = vector.load %arg7[%c0_35, %c12, %c0_36] : memref<1x24x64xf32, #tpu.memory_space<vmem>>, vector<1x1x32xf32>
    %71 = vector.shape_cast %70 : vector<1x1x32xf32> to vector<1x32xf32>
    %72 = vector.broadcast %71 : vector<1x32xf32> to vector<8x32xf32>
    %73 = arith.addf %69, %72 : vector<8x32xf32>
    %74 = arith.addf %3, %73 : vector<8x32xf32>
    %c0_37 = arith.constant 0 : index
    %c15 = arith.constant 15 : index
    %c0_38 = arith.constant 0 : index
    %75 = vector.load %arg7[%c0_37, %c15, %c0_38] : memref<1x24x64xf32, #tpu.memory_space<vmem>>, vector<1x1x32xf32>
    %76 = vector.shape_cast %75 : vector<1x1x32xf32> to vector<1x32xf32>
    %c0_39 = arith.constant 0 : index
    %c16 = arith.constant 16 : index
    %c0_40 = arith.constant 0 : index
    %77 = vector.load %arg7[%c0_39, %c16, %c0_40] : memref<1x24x64xf32, #tpu.memory_space<vmem>>, vector<1x1x32xf32>
    %78 = vector.shape_cast %77 : vector<1x1x32xf32> to vector<1x32xf32>
    %cst_41 = arith.constant dense<0.000000e+00> : vector<8xf32>
    %79 = vector.multi_reduction <add>, %74, %cst_41 [1] : vector<8x32xf32> to vector<8xf32>
    %80 = vector.shape_cast %79 : vector<8xf32> to vector<8x1xf32>
    %cst_42 = arith.constant 3.200000e+01 : f32
    %81 = vector.broadcast %cst_42 : f32 to vector<8x1xf32>
    %82 = arith.divf %80, %81 : vector<8x1xf32>
    %83 = vector.broadcast %82 : vector<8x1xf32> to vector<8x32xf32>
    %84 = arith.subf %74, %83 : vector<8x32xf32>
    %85 = arith.mulf %84, %84 : vector<8x32xf32>
    %cst_43 = arith.constant dense<0.000000e+00> : vector<8xf32>
    %86 = vector.multi_reduction <add>, %85, %cst_43 [1] : vector<8x32xf32> to vector<8xf32>
    %87 = vector.shape_cast %86 : vector<8xf32> to vector<8x1xf32>
    %cst_44 = arith.constant 3.200000e+01 : f32
    %88 = vector.broadcast %cst_44 : f32 to vector<8x1xf32>
    %89 = arith.divf %87, %88 : vector<8x1xf32>
    %90 = vector.broadcast %82 : vector<8x1xf32> to vector<8x32xf32>
    %91 = arith.subf %74, %90 : vector<8x32xf32>
    %cst_45 = arith.constant 9.99999974E-6 : f32
    %92 = vector.broadcast %cst_45 : f32 to vector<8x1xf32>
    %93 = arith.addf %89, %92 : vector<8x1xf32>
    %94 = math.rsqrt %93 : vector<8x1xf32>
    %95 = vector.broadcast %94 : vector<8x1xf32> to vector<8x32xf32>
    %96 = arith.mulf %91, %95 : vector<8x32xf32>
    %97 = vector.broadcast %76 : vector<1x32xf32> to vector<8x32xf32>
    %98 = arith.mulf %96, %97 : vector<8x32xf32>
    %99 = vector.broadcast %78 : vector<1x32xf32> to vector<8x32xf32>
    %100 = arith.addf %98, %99 : vector<8x32xf32>
    %c0_46 = arith.constant 0 : index
    %c1 = arith.constant 1 : index
    %c0_47 = arith.constant 0 : index
    %c0_48 = arith.constant 0 : index
    %101 = vector.load %arg6[%c0_46, %c1, %c0_47, %c0_48] : memref<1x3x64x64xbf16, #tpu.memory_space<vmem>>, vector<1x1x32x64xbf16>
    %102 = vector.shape_cast %101 : vector<1x1x32x64xbf16> to vector<32x64xbf16>
    %c0_49 = arith.constant 0 : index
    %c2 = arith.constant 2 : index
    %c0_50 = arith.constant 0 : index
    %c0_51 = arith.constant 0 : index
    %103 = vector.load %arg6[%c0_49, %c2, %c0_50, %c0_51] : memref<1x3x64x64xbf16, #tpu.memory_space<vmem>>, vector<1x1x64x32xbf16>
    %104 = vector.shape_cast %103 : vector<1x1x64x32xbf16> to vector<64x32xbf16>
    %105 = arith.truncf %100 : vector<8x32xf32> to vector<8x32xbf16>
    %cst_52 = arith.constant dense<0.000000e+00> : vector<8x64xf32>
    %106 = tpu.matmul %105, %102, %cst_52 {dimension_numbers = #tpu.dot_dimension_numbers<[1], [0], [0], [1], [0, 0, 1, 1], [], []>} : vector<8x32xbf16>, vector<32x64xbf16>, vector<8x64xf32> -> vector<8x64xf32>
    %c0_53 = arith.constant 0 : index
    %c13 = arith.constant 13 : index
    %c0_54 = arith.constant 0 : index
    %107 = vector.load %arg7[%c0_53, %c13, %c0_54] : memref<1x24x64xf32, #tpu.memory_space<vmem>>, vector<1x1x64xf32>
    %108 = vector.shape_cast %107 : vector<1x1x64xf32> to vector<1x64xf32>
    %109 = vector.broadcast %108 : vector<1x64xf32> to vector<8x64xf32>
    %110 = arith.addf %106, %109 : vector<8x64xf32>
    %111 = arith.mulf %110, %110 : vector<8x64xf32>
    %112 = arith.mulf %110, %111 : vector<8x64xf32>
    %cst_55 = arith.constant 4.471500e-02 : f32
    %113 = vector.broadcast %cst_55 : f32 to vector<8x64xf32>
    %114 = arith.mulf %113, %112 : vector<8x64xf32>
    %115 = arith.addf %110, %114 : vector<8x64xf32>
    %cst_56 = arith.constant 0.797884583 : f32
    %116 = vector.broadcast %cst_56 : f32 to vector<8x64xf32>
    %117 = arith.mulf %116, %115 : vector<8x64xf32>
    %118 = math.tanh %117 : vector<8x64xf32>
    %cst_57 = arith.constant 1.000000e+00 : f32
    %119 = vector.broadcast %cst_57 : f32 to vector<8x64xf32>
    %120 = arith.addf %119, %118 : vector<8x64xf32>
    %cst_58 = arith.constant 5.000000e-01 : f32
    %121 = vector.broadcast %cst_58 : f32 to vector<8x64xf32>
    %122 = arith.mulf %121, %120 : vector<8x64xf32>
    %123 = arith.mulf %110, %122 : vector<8x64xf32>
    %124 = arith.truncf %123 : vector<8x64xf32> to vector<8x64xbf16>
    %cst_59 = arith.constant dense<0.000000e+00> : vector<8x32xf32>
    %125 = tpu.matmul %124, %104, %cst_59 {dimension_numbers = #tpu.dot_dimension_numbers<[1], [0], [0], [1], [0, 0, 1, 1], [], []>} : vector<8x64xbf16>, vector<64x32xbf16>, vector<8x32xf32> -> vector<8x32xf32>
    %c0_60 = arith.constant 0 : index
    %c14 = arith.constant 14 : index
    %c0_61 = arith.constant 0 : index
    %126 = vector.load %arg7[%c0_60, %c14, %c0_61] : memref<1x24x64xf32, #tpu.memory_space<vmem>>, vector<1x1x32xf32>
    %127 = vector.shape_cast %126 : vector<1x1x32xf32> to vector<1x32xf32>
    %128 = vector.broadcast %127 : vector<1x32xf32> to vector<8x32xf32>
    %129 = arith.addf %125, %128 : vector<8x32xf32>
    %130 = arith.addf %100, %129 : vector<8x32xf32>
    %c0_62 = arith.constant 0 : index
    %c17 = arith.constant 17 : index
    %c0_63 = arith.constant 0 : index
    %131 = vector.load %arg7[%c0_62, %c17, %c0_63] : memref<1x24x64xf32, #tpu.memory_space<vmem>>, vector<1x1x32xf32>
    %132 = vector.shape_cast %131 : vector<1x1x32xf32> to vector<1x32xf32>
    %c0_64 = arith.constant 0 : index
    %c18 = arith.constant 18 : index
    %c0_65 = arith.constant 0 : index
    %133 = vector.load %arg7[%c0_64, %c18, %c0_65] : memref<1x24x64xf32, #tpu.memory_space<vmem>>, vector<1x1x32xf32>
    %134 = vector.shape_cast %133 : vector<1x1x32xf32> to vector<1x32xf32>
    %cst_66 = arith.constant dense<0.000000e+00> : vector<8xf32>
    %135 = vector.multi_reduction <add>, %130, %cst_66 [1] : vector<8x32xf32> to vector<8xf32>
    %136 = vector.shape_cast %135 : vector<8xf32> to vector<8x1xf32>
    %cst_67 = arith.constant 3.200000e+01 : f32
    %137 = vector.broadcast %cst_67 : f32 to vector<8x1xf32>
    %138 = arith.divf %136, %137 : vector<8x1xf32>
    %139 = vector.broadcast %138 : vector<8x1xf32> to vector<8x32xf32>
    %140 = arith.subf %130, %139 : vector<8x32xf32>
    %141 = arith.mulf %140, %140 : vector<8x32xf32>
    %cst_68 = arith.constant dense<0.000000e+00> : vector<8xf32>
    %142 = vector.multi_reduction <add>, %141, %cst_68 [1] : vector<8x32xf32> to vector<8xf32>
    %143 = vector.shape_cast %142 : vector<8xf32> to vector<8x1xf32>
    %cst_69 = arith.constant 3.200000e+01 : f32
    %144 = vector.broadcast %cst_69 : f32 to vector<8x1xf32>
    %145 = arith.divf %143, %144 : vector<8x1xf32>
    %146 = vector.broadcast %138 : vector<8x1xf32> to vector<8x32xf32>
    %147 = arith.subf %130, %146 : vector<8x32xf32>
    %cst_70 = arith.constant 9.99999974E-6 : f32
    %148 = vector.broadcast %cst_70 : f32 to vector<8x1xf32>
    %149 = arith.addf %145, %148 : vector<8x1xf32>
    %150 = math.rsqrt %149 : vector<8x1xf32>
    %151 = vector.broadcast %150 : vector<8x1xf32> to vector<8x32xf32>
    %152 = arith.mulf %147, %151 : vector<8x32xf32>
    %153 = vector.broadcast %132 : vector<1x32xf32> to vector<8x32xf32>
    %154 = arith.mulf %152, %153 : vector<8x32xf32>
    %155 = vector.broadcast %134 : vector<1x32xf32> to vector<8x32xf32>
    %156 = arith.addf %154, %155 : vector<8x32xf32>
    %c0_71 = arith.constant 0 : index
    %c0_72 = arith.constant 0 : index
    %157 = vector.load %arg11[%c0_71, %c0_72] : memref<8x32xf32, #tpu.memory_space<vmem>>, vector<8x32xf32>
    tpu.vector_store %arg11[%c0_71, %c0_72], %156 {strides = array<i32>} : memref<8x32xf32, #tpu.memory_space<vmem>>, vector<8x32xf32>,
    %c1_i32 = arith.constant 1 : i32
    %158 = arith.cmpi eq, %arg1, %c1_i32 : i32
    %159 = arith.extui %158 : i1 to i32
    %c0_i32_73 = arith.constant 0 : i32
    %160 = arith.cmpi ne, %159, %c0_i32_73 : i32
    scf.if %160 {
      %cst_74 = arith.constant dense<0.000000e+00> : vector<32xf32>
      %161 = vector.multi_reduction <add>, %156, %cst_74 [0] : vector<8x32xf32> to vector<32xf32>
      %162 = vector.shape_cast %161 : vector<32xf32> to vector<1x32xf32>
      %cst_75 = arith.constant 1.250000e-01 : f32
      %163 = vector.broadcast %cst_75 : f32 to vector<1x32xf32>
      %164 = arith.mulf %162, %163 : vector<1x32xf32>
      %c0_76 = arith.constant 0 : index
      %c0_77 = arith.constant 0 : index
      %c0_78 = arith.constant 0 : index
      %165 = vector.load %arg9[%c0_76, %c0_77, %c0_78] : memref<2x32x64xbf16, #tpu.memory_space<vmem>>, vector<1x32x32xbf16>
      %166 = vector.shape_cast %165 : vector<1x32x32xbf16> to vector<32x32xbf16>
      %c1_79 = arith.constant 1 : index
      %c0_80 = arith.constant 0 : index
      %c0_81 = arith.constant 0 : index
      %167 = vector.load %arg9[%c1_79, %c0_80, %c0_81] : memref<2x32x64xbf16, #tpu.memory_space<vmem>>, vector<1x32x8xbf16>
      %168 = vector.shape_cast %167 : vector<1x32x8xbf16> to vector<32x8xbf16>
      %169 = arith.truncf %164 : vector<1x32xf32> to vector<1x32xbf16>
      %cst_82 = arith.constant dense<0.000000e+00> : vector<1x32xf32>
      %170 = tpu.matmul %169, %166, %cst_82 {dimension_numbers = #tpu.dot_dimension_numbers<[1], [0], [0], [1], [0, 0, 1, 1], [], []>} : vector<1x32xbf16>, vector<32x32xbf16>, vector<1x32xf32> -> vector<1x32xf32>
      %c2_83 = arith.constant 2 : index
      %c0_84 = arith.constant 0 : index
      %171 = vector.load %arg8[%c2_83, %c0_84] : memref<4x64xf32, #tpu.memory_space<vmem>>, vector<1x32xf32>
      %172 = arith.addf %170, %171 : vector<1x32xf32>
      %cst_85 = arith.constant 0.000000e+00 : f32
      %173 = vector.broadcast %cst_85 : f32 to vector<1x32xf32>
      %174 = arith.maximumf %172, %173 : vector<1x32xf32>
      %175 = arith.truncf %174 : vector<1x32xf32> to vector<1x32xbf16>
      %cst_86 = arith.constant dense<0.000000e+00> : vector<1x8xf32>
      %176 = tpu.matmul %175, %168, %cst_86 {dimension_numbers = #tpu.dot_dimension_numbers<[1], [0], [0], [1], [0, 0, 1, 1], [], []>} : vector<1x32xbf16>, vector<32x8xbf16>, vector<1x8xf32> -> vector<1x8xf32>
      %c3 = arith.constant 3 : index
      %c0_87 = arith.constant 0 : index
      %177 = vector.load %arg8[%c3, %c0_87] : memref<4x64xf32, #tpu.memory_space<vmem>>, vector<1x8xf32>
      %178 = arith.addf %176, %177 : vector<1x8xf32>
      %179 = vector.shape_cast %178 : vector<1x8xf32> to vector<1x1x8xf32>
      %c0_88 = arith.constant 0 : index
      %c0_89 = arith.constant 0 : index
      %c0_90 = arith.constant 0 : index
      %180 = vector.load %arg10[%c0_88, %c0_89, %c0_90] : memref<1x1x8xf32, #tpu.memory_space<vmem>>, vector<1x1x8xf32>
      tpu.vector_store %arg10[%c0_88, %c0_89, %c0_90], %179 {strides = array<i32>} : memref<1x1x8xf32, #tpu.memory_space<vmem>>, vector<1x1x8xf32>,
    } else {
    }
    return
  }
  func.func @transform_0(%arg0: i32, %arg1: i32, %arg2: memref<2x8xi32, #tpu.memory_space<smem>>) -> (i32, i32) {
    %c0_i32 = arith.constant 0 : i32
    %c0_i32_0 = arith.constant 0 : i32
    %c0_i32_1 = arith.constant 0 : i32
    return %c0_i32, %c0_i32_0 : i32, i32
  }
  func.func @transform_1(%arg0: i32, %arg1: i32, %arg2: memref<2x8xi32, #tpu.memory_space<smem>>) -> (i32, i32) {
    %c0_i32 = arith.constant 0 : i32
    %c0_i32_0 = arith.constant 0 : i32
    %c0_i32_1 = arith.constant 0 : i32
    return %c0_i32, %c0_i32_0 : i32, i32
  }
  func.func @transform_2(%arg0: i32, %arg1: i32, %arg2: memref<2x8xi32, #tpu.memory_space<smem>>) -> (i32, i32, i32, i32) {
    %c0_i32 = arith.constant 0 : i32
    %c0_i32_0 = arith.constant 0 : i32
    %c0_i32_1 = arith.constant 0 : i32
    %c0_i32_2 = arith.constant 0 : i32
    return %arg1, %c0_i32, %c0_i32_0, %c0_i32_1 : i32, i32, i32, i32
  }
  func.func @transform_3(%arg0: i32, %arg1: i32, %arg2: memref<2x8xi32, #tpu.memory_space<smem>>) -> (i32, i32, i32, i32) {
    %c0_i32 = arith.constant 0 : i32
    %c0_i32_0 = arith.constant 0 : i32
    %c0_i32_1 = arith.constant 0 : i32
    %c0_i32_2 = arith.constant 0 : i32
    return %arg1, %c0_i32, %c0_i32_0, %c0_i32_1 : i32, i32, i32, i32
  }
  func.func @transform_4(%arg0: i32, %arg1: i32, %arg2: memref<2x8xi32, #tpu.memory_space<smem>>) -> (i32, i32, i32) {
    %c0_i32 = arith.constant 0 : i32
    %c0_i32_0 = arith.constant 0 : i32
    %c0_i32_1 = arith.constant 0 : i32
    return %arg1, %c0_i32, %c0_i32_0 : i32, i32, i32
  }
  func.func @transform_5(%arg0: i32, %arg1: i32, %arg2: memref<2x8xi32, #tpu.memory_space<smem>>) -> (i32, i32) {
    %c0_i32 = arith.constant 0 : i32
    %c0_i32_0 = arith.constant 0 : i32
    %c0_i32_1 = arith.constant 0 : i32
    return %c0_i32, %c0_i32_0 : i32, i32
  }
  func.func @transform_6(%arg0: i32, %arg1: i32, %arg2: memref<2x8xi32, #tpu.memory_space<smem>>) -> (i32, i32, i32) {
    %c0_i32 = arith.constant 0 : i32
    %c0_i32_0 = arith.constant 0 : i32
    %c0_i32_1 = arith.constant 0 : i32
    %c0_i32_2 = arith.constant 0 : i32
    return %c0_i32, %c0_i32_0, %c0_i32_1 : i32, i32, i32
  }
  func.func @transform_7(%arg0: i32, %arg1: i32, %arg2: memref<2x8xi32, #tpu.memory_space<smem>>) -> (i32, i32, i32) {
    %c0_i32 = arith.constant 0 : i32
    %c0_i32_0 = arith.constant 0 : i32
    %c0_i32_1 = arith.constant 0 : i32
    return %arg0, %c0_i32, %c0_i32_0 : i32, i32, i32
  }
}

</mosaic_0001>

<bundles_post_ra>
// kernel: tpu_custom_call.1
= control target key start
LH: loop header
LB: loop body
LE: loop exit
PB: predicated region body
PF: predicated region fallthrough
CT: control target
= control target key end

     0   :  { %s1942_s30 = smov [#allocation4]   ;;  %s2302_s0 = inlined_call_operand.vmem [shape: s32[2,8], index: 0, kind: input, shape index: {}]   ;;  %s2303_s1 = inlined_call_operand.vmem [shape: f32[2,8], index: 1, kind: input, shape index: {}]   ;;  %s2304_s2 = inlined_call_operand.vmem [shape: f32[112,32], index: 2, kind: input, shape index: {}]   ;;  %s2305_s3 = inlined_call_operand.vmem [shape: bf16[2,12,32,8], index: 3, kind: input, shape index: {}]   ;;  %s2306_s4 = inlined_call_operand.vmem [shape: bf16[2,3,64,64], index: 4, kind: input, shape index: {}]   ;;  %s2307_s5 = inlined_call_operand.vmem [shape: f32[2,24,64], index: 5, kind: input, shape index: {}]   ;;  %s2308_s6 = inlined_call_operand.vmem [shape: f32[4,64], index: 6, kind: input, shape index: {}]   ;;  %s2309_s7 = inlined_call_operand.vmem [shape: bf16[2,32,64], index: 7, kind: input, shape index: {}]   ;;  %s2310_s8 = inlined_call_operand.hbm [shape: f32[2,1,8], index: 8, kind: output, shape index: {}]  }
   0x1   :  { %2323 = sst [smem:[#allocation20_spill]] %s2305_s3  ;;  %s14_s29 = sshll.u32 %s2302_s0, 4  ;;  %s15_s29 = int_to_ptr.vmem [resolvable:$true] %s14_s29 }
   0x2   :  { %2324 = sst [smem:[#allocation21_spill]] %s2306_s4 }
   0x3   :  { %2325 = sst [smem:[#allocation22_spill]] %s2307_s5 }
   0x4   :  { %17 = dma.vmem_to_smem %s15_s29, 32, %s1942_s30, [#allocation3] }
   0x5   :  { %1904 = dma.done.wait [#allocation3], 32 }
   0x6   :  { %1905 = vsyncadd [#allocation3], 4294967264 }
   0x7   :  { %20 = sfence }
   0x8   :  { %21 = vsyncpa [#allocation6], 0 }
   0x9   :  { %23 = vsyncpa [#allocation6 + $0x1], 0  ;;  %s1996_s9 = smov 0   ;;  %s1998_s10 = smov 0  }
   0xa   :  { %s2000_s11 = smov 0   ;;  %s2002_s12 = smov 0  }
   0xb   :  { %s2004_s13 = smov 0   ;;  %s2006_s14 = smov 0  }
   0xc   :  { %s2008_s0 = smov 0   ;;  %s2010_s15 = smov 0  }
   0xd LB: > { %2326 = sst [smem:[#allocation9_spill]] %s1912_s9  ;;  %s1449_s16 = sadd.s32 4294967295, %s1940_s15   ;;  %s1940_s15 = sphi %s2010_s15, %s29_s15   ;;  %s1936_s0 = sphi %s2008_s0, %s2354_s0   ;;  %s1932_s14 = sphi %s2006_s14, %s2353_s14   ;;  %s1928_s13 = sphi %s2004_s13, %s2352_s13   ;;  %s1924_s12 = sphi %s2002_s12, %s2351_s12   ;;  %s1920_s11 = sphi %s2000_s11, %s2350_s11   ;;  %s1916_s10 = sphi %s1998_s10, %s2349_s10   ;;  %s1912_s9 = sphi %s1996_s9, %s2348_s9  }
   0xe   : > { %2327 = sst [smem:[#allocation10_spill]] %s1916_s10  ;;  %s1450_s17 = sadd.s32 4294967294, %s1940_s15  }
   0xf   : > { %2328 = sst [smem:[#allocation11_spill]] %s1920_s11  ;;  %s38_s18 = sadd.s32 1, %s1932_s14 }
  0x10   : > { %2329 = sst [smem:[#allocation12_spill]] %s1932_s14  ;;  %p39_p0 = scmp.ge.s32.totalorder %s38_s18, 2 }
  0x11   : > { %2330 = sst [smem:[#allocation13_spill]] %s1936_s0  ;;  %s41_s19 = sadd.s32 1, %s1936_s0 }
  0x12   : > { %2331 = sst [smem:[#allocation14_spill]] %s1940_s15  ;;  %p220_p1 = scmp.ne.s32.totalorder %s1920_s11, %s1916_s10 }
  0x13   : > { %p221_p2 = scmp.eq.s32.totalorder %s1449_s16, 3  ;;  %s2356_s18 = smov (%p39_p0, %s38_s18), 0 }
  0x14   : > { %2332 = sst [smem:[#allocation15_spill]] %s2356_s18  ;;  %s2358_s19 = smov (!%p39_p0, %s41_s19), %s1936_s0 }
  0x15   : > { %p2045_p3 = por %p221_p2, %p220_p1  ;;  %p226_p4 = scmp.ne.s32.totalorder %s1916_s10, %s1912_s9 }
  0x16   : > { %p43_p5 = scmp.ge.s32.totalorder %s2358_s19, 2  ;;  %p227_p6 = scmp.eq.s32.totalorder %s1450_s17, 3 }
  0x17   : > { %s2333_s20 = scalar_select %p2045_p3, 1, 0 }
  0x18   : > { %p1453_p7 = scmp.ge.s32.totalorder %s1940_s15, 1  ;;  %p281_p8 = scmp.lt.s32.totalorder %s1940_s15, 5 }
  0x19   : > { %2334 = sst [smem:[#allocation16_spill]] %s2333_s20  ;;  %s2360_s19 = smov (%p43_p5, %s2358_s19), 0 }
  0x1a   : > { %2335 = sst [smem:[#allocation17_spill]] %s2360_s19  ;;  %p2055_p9 = por %p227_p6, %p226_p4 }
  0x1b   : > { %p282_p10 = pnand %p1453_p7, %p281_p8  ;;  %s207_s22 = ssub.s32 %s1936_s0, %s2360_s19 }
  0x1c   : > { %s2336_s21 = scalar_select %p2055_p9, 1, 0 }
  0x1d   : > { %s210_s23 = sadd.s32 1, %s1920_s11  ;;  %p208_p11 = scmp.eq.s32.totalorder %s207_s22, 0 }
  0x1e   : > { %2337 = sst [smem:[#allocation18_spill]] %s2336_s21  ;;  %285 = sbr.rel (%p282_p10) target bundleno = 2411 (0x96b), region = 48 }
  0x1f   : > { %s2063_s24 = scalar_select %p208_p11, %s1920_s11, %s210_s23  }
  0x20   : > { %s2315_s25 = sand.u32 (!%p282_p10), 1, %s1916_s10   ;;  %p322_p12 = scmp.lt.s32.totalorder (!%p282_p10), %s1924_s12, 1 }
  0x21   : > { %2338 = sst [smem:[#allocation19_spill]] %s2063_s24  ;;  %s2085_s24 = scalar_lea.vmem (!%p282_p10), [#allocation5], %s2315_s25 }
  0x22   : > { %s2339_s3 = sld [smem:[#allocation20_spill]] (!%p282_p10)  ;;  %p1457_p13 = scmp.ne.s32.totalorder (!%p282_p10), %s1924_s12, 0 }
  0x23   : > { %s323_s26 = scalar_select %p322_p12, %s1924_s12, 1 }
  0x24   : > { %s2340_s4 = sld [smem:[#allocation21_spill]] }
  0x25   : > { %s1715_s27 = smul.u32 192, %s323_s26  ;;  %s2341_s5 = sld [smem:[#allocation22_spill]] }
  0x26   : > { %s1716_s28 = smul.u32 96, %s323_s26 }
  0x27   : > { %s1717_s17 = smul.u32 24, %s323_s26 }
  0x28   : > { %s2071_s16 = scalar_lea.vmem %s2339_s3, %s1715_s27  ;;  %341 = sbr.rel (%p1457_p13) target bundleno = 338 (0x152), region = 52 }
  0x29   : > { %s1458_s27 = sshll.u32 (!%p1457_p13), %s1928_s13, 7 }
  0x2a   : > { %s2076_s23 = scalar_lea.vmem %s2340_s4, %s1716_s28  ;;  %s343_s29 = sld [smem:[#allocation4 + %s1458_s27]] (!%p1457_p13) }
  0x2b   : > { %s2081_s14 = scalar_lea.vmem %s2341_s5, %s1717_s17  ;;  %s348_s26 = sadd.s32 (!%p1457_p13), 1, %s1458_s27 }
  0x2c   : > { %s349_s30 = sld [smem:[#allocation4 + %s348_s26]] (!%p1457_p13)  ;;  %s353_s3 = sadd.s32 (!%p1457_p13), 2, %s1458_s27 }
  0x2d   : > { %s354_s19 = sld [smem:[#allocation4 + %s353_s3]]  ;;  %s358_s28 = sadd.s32 3, %s1458_s27  ;;  %vm346_vm0 = vcmask 253952   ;;  %v384_v8 = vld [vmem:[%s2304_s2 + $0x68] sm:$0xff]  ;;  %vm388_vm1 = vcmask 261120   ;;  %v1943_v12 = vmov 32.0  }
  0x2e   : > { %s359_s22 = sld [smem:[#allocation4 + %s358_s28]]  ;;  %s363_s4 = sadd.s32 4, %s1458_s27  ;;  %1797 = vrcp.f32 %v1943_v12  ;;  %v1795_v33 = vld [vmem:[%s2308_s6] ss:$0 sm:$0xff]  ;;  %v1796_v35 = vld [vmem:[%s2308_s6 + $0x1] ss:$0 sm:$0xff] }
  0x2f   : > { %s364_s11 = sld [smem:[#allocation4 + %s363_s4]]  ;;  %s368_s0 = sadd.s32 5, %s1458_s27 }
  0x30   : > { %s369_s18 = sld [smem:[#allocation4 + %s368_s0]]  ;;  %s373_s17 = sadd.s32 6, %s1458_s27 }
  0x31   : > { %s344_s21 = scalar_lea.vmem %s2304_s2, %s343_s29  ;;  %s374_s9 = sld [smem:[#allocation4 + %s373_s17]] }
  0x32   : > { %v345_v0 = vld [vmem:[%s344_s21] sm:$0x1]  ;;  %s350_s26 = scalar_lea.vmem %s2304_s2, %s349_s30  ;;  %s378_s10 = sadd.s32 7, %s1458_s27 }
  0x33   : > { %347 = vst.msk [vmem:[#allocation2] sm:$0x1] %vm346_vm0, %v345_v0  ;;  %v351_v1 = vld [vmem:[%s350_s26] sm:$0x1]  ;;  %s355_s28 = scalar_lea.vmem %s2304_s2, %s354_s19  ;;  %s379_s0 = sld [smem:[#allocation4 + %s378_s10]] }
  0x34   : > { %352 = vst.msk [vmem:[#allocation2 + $0x1] sm:$0x1] %vm346_vm0, %v351_v1  ;;  %v356_v2 = vld [vmem:[%s355_s28] sm:$0x1]  ;;  %s360_s21 = scalar_lea.vmem %s2304_s2, %s359_s22  ;;  %v1798_v13 = vpop.eup %1797 }
  0x35   : > { %357 = vst.msk [vmem:[#allocation2 + $0x2] sm:$0x1] %vm346_vm0, %v356_v2  ;;  %v361_v3 = vld [vmem:[%s360_s21] sm:$0x1]  ;;  %s365_s27 = scalar_lea.vmem %s2304_s2, %s364_s11  ;;  %v393_v14 = vmul.f32 32.0, %v1798_v13  ;;  %vm397_vm2 = vweird.f32 %v1798_v13 }
  0x36   : > { %362 = vst.msk [vmem:[#allocation2 + $0x3] sm:$0x1] %vm346_vm0, %v361_v3  ;;  %v366_v4 = vld [vmem:[%s365_s27] sm:$0x1]  ;;  %s370_s10 = scalar_lea.vmem %s2304_s2, %s369_s18 }
  0x37   : > { %367 = vst.msk [vmem:[#allocation2 + $0x4] sm:$0x1] %vm346_vm0, %v366_v4  ;;  %v371_v5 = vld [vmem:[%s370_s10] sm:$0x1]  ;;  %s375_s22 = scalar_lea.vmem %s2304_s2, %s374_s9  ;;  %v394_v15 = vsub.f32 1.0, %v393_v14 }
  0x38   : > { %372 = vst.msk [vmem:[#allocation2 + $0x5] sm:$0x1] %vm346_vm0, %v371_v5  ;;  %v376_v6 = vld [vmem:[%s375_s22] sm:$0x1] }
  0x39   : > { %377 = vst.msk [vmem:[#allocation2 + $0x6] sm:$0x1] %vm346_vm0, %v376_v6  ;;  %s380_s3 = scalar_lea.vmem %s2304_s2, %s379_s0  ;;  %v395_v16 = vmul.f32 %v1798_v13, %v394_v15 }
  0x3a   : > { %v381_v7 = vld [vmem:[%s380_s3] sm:$0x1] }
  0x3b   : > { %382 = vst.msk [vmem:[#allocation2 + $0x7] sm:$0x1] %vm346_vm0, %v381_v7  ;;  %v396_v17 = vadd.f32 %v1798_v13, %v395_v16 }
  0x3d   : > { %v398_v18 = vsel %vm397_vm2, %v1798_v13, %v396_v17 }
  0x42   : > { %v383_v9 = vld [vmem:[#allocation2] sm:$0xff] }
  0x43   : > { %v385_v10 = vadd.f32 %v384_v8, %v383_v9 }
  0x45   : > { %v389_v11 = vsel %vm388_vm1, %v385_v10, 0.0 }
  0x46   : > { %390 = vadd.xlane.f32.xlu0 %v389_v11 }
  0xb9   : > { %v391_v19 = vpop.xlane.xlu0 %390 }
  0xba   : > { %v399_v20 = vmul.f32 %v398_v18, %v391_v19 }
  0xbc   : > { %v400_v21 = vsub.f32 %v385_v10, %v399_v20 }
  0xbe   : > { %v401_v22 = vmul.f32 %v400_v21, %v400_v21 }
  0xc0   : > { %v402_v23 = vsel %vm388_vm1, %v401_v22, 0.0 }
  0xc1   : > { %403 = vadd.xlane.f32.xlu0 %v402_v23 }
 0x134   : > { %v404_v24 = vpop.xlane.xlu0 %403 }
 0x135   : > { %v405_v25 = vmul.f32 %v404_v24, %v398_v18 }
 0x137   : > { %v406_v26 = vadd.f32 1e-05, %v405_v25 }
 0x139   : > { %1799 = vrsqrt.f32 %v406_v26  ;;  %vm413_vm4 = vweird.f32 %v406_v26 }
 0x13f   : > { %v1800_v27 = vpop.eup %1799 }
 0x140   : > { %v408_v28 = vmul.f32 %v1800_v27, %v406_v26  ;;  %vm414_vm3 = vweird.f32 %v1800_v27 }
 0x141   : > { %vm415_vm5 = vmor %vm413_vm4, %vm414_vm3 }
 0x142   : > { %v409_v29 = vmul.f32 %v1800_v27, %v408_v28 }
 0x144   : > { %v410_v30 = vmul.f32 0.5, %v409_v29 }
 0x146   : > { %v411_v31 = vsub.f32 1.5, %v410_v30 }
 0x148   : > { %v412_v32 = vmul.f32 %v1800_v27, %v411_v31 }
 0x14a   : > { %v416_v34 = vsel %vm415_vm5, %v1800_v27, %v412_v32 }
 0x14b   : > { %v417_v36 = vmul.f32 %v416_v34, %v400_v21 }
 0x14d   : > { %v419_v37 = vmul.f32 %v1795_v33, %v417_v36 }
 0x14f   : > { %v421_v38 = vadd.f32 %v1796_v35, %v419_v37 }
 0x151   : > { %422 = vst.msk [vmem:[#allocation2] sm:$0xff] %vm388_vm1, %v421_v38 }
 0x152 PF: > { %v1682_v39 = vld [vmem:[%s2071_s16 + $0x18] sm:$0xff]  ;;  %v1684_v40 = vld [vmem:[%s2071_s16 + $0x28] sm:$0xff]  ;;  %v1681_v42 = vld [vmem:[%s2071_s16 + $0x10] sm:$0xff]  ;;  %vm514_vm6 = vcmask 261120   ;;  %vm831_vm7 = vcmask 64512   ;;  %vm963_vm8 = vcmask 1043456   ;;  %s424_s21 = scalar_lea.vmem %s2303_s1, %s1928_s13 }
 0x153   : > { %v1686_v41 = vld [vmem:[%s2071_s16 + $0x38] sm:$0xff]  ;;  %549 = vmatpush.bf16.msra.mxu1 %v1682_v39  ;;  %574 = vmatpush.bf16.msra.mxu2 %v1684_v40  ;;  %v1683_v43 = vld [vmem:[%s2071_s16 + $0x20] sm:$0xff]  ;;  %v1680_v45 = vld [vmem:[%s2071_s16 + $0x8] sm:$0xff]  ;;  %s1944_s15 = smov 8   ;;  %s1945_s20 = smov 16   ;;  %vm1050_vm9 = vcmask 130048  }
 0x154   : > { %599 = vmatpush.bf16.msra.mxu3 %v1686_v41  ;;  %v1685_v46 = vld [vmem:[%s2071_s16 + $0x30] sm:$0xff]  ;;  %v1690_v47 = vld [vmem:[%s2071_s16 + $0x58] sm:$0xff]  ;;  %524 = vmatpush.bf16.msra.mxu0 %v1680_v45  ;;  %v1679_v48 = vld [vmem:[%s2071_s16] sm:$0xff]  ;;  %s1946_s27 = smov 24   ;;  %vm1052_vm10 = vcmask 195584   ;;  %vm1206_vm15 = vcmask 523264  }
 0x155   : > { %v1692_v49 = vld [vmem:[%s2071_s16 + $0x68] sm:$0xff]  ;;  %v1694_v51 = vld [vmem:[%s2071_s16 + $0x78] sm:$0xff]  ;;  %v1689_v52 = vld [vmem:[%s2071_s16 + $0x50] sm:$0xff]  ;;  %p1654_p0 = scmp.ne.s32.totalorder %s1924_s12, 1 }
 0x156   : > { %v1688_v53 = vld [vmem:[%s2071_s16 + $0x48] sm:$0xff]  ;;  %v1691_v54 = vld [vmem:[%s2071_s16 + $0x60] sm:$0xff]  ;;  %v1693_v56 = vld [vmem:[%s2071_s16 + $0x70] sm:$0xff] }
 0x157   : > { %550 = vmatpush.bf16.msra.mxu1 %v1681_v42  ;;  %575 = vmatpush.bf16.msra.mxu2 %v1683_v43  ;;  %v1687_v55 = vld [vmem:[%s2071_s16 + $0x40] sm:$0xff]  ;;  %v1700_v57 = vld [vmem:[%s2071_s16 + $0xa8] sm:$0xff]  ;;  %v1698_v58 = vld [vmem:[%s2071_s16 + $0x98] sm:$0xff] }
 0x158   : > { %v2138_v44 = vld [vmem:[#allocation2] sm:$0xff]  ;;  %600 = vmatpush.bf16.msra.mxu3 %v1685_v46  ;;  %525 = vmatpush.bf16.msra.mxu0 %v1679_v48  ;;  %v1697_v60 = vld [vmem:[%s2071_s16 + $0x90] sm:$0xff]  ;;  %v1702_v61 = vld [vmem:[%s2071_s16 + $0xb8] sm:$0xff] }
 0x159   : > { %v428_v50 = vpack.c.bf16 %v2138_v44, %v2138_v44  ;;  %v1699_v59 = vld [vmem:[%s2071_s16 + $0xa0] sm:$0xff]  ;;  %v1696_v62 = vld [vmem:[%s2071_s16 + $0x88] sm:$0xff]  ;;  %v1701_v63 = vld [vmem:[%s2071_s16 + $0xb0] sm:$0xff] }
 0x15a   : > { %v1695_v0 = vld [vmem:[%s2071_s16 + $0x80] sm:$0xff] }
 0x15b   : > { %657 = vmatpush.bf16.msrb.mxu1 %v1690_v47  ;;  %682 = vmatpush.bf16.msrb.mxu2 %v1692_v49  ;;  %v484_v4 = vld [vmem:[%s2081_s14 + $0x4] sm:$0xf]  ;;  %v479_v9 = vld [vmem:[%s2081_s14] sm:$0xf] }
 0x15c   : > { %1508 = vmatmul.msk.bf16.vlgmr.msra.gmra.mxu1 %vm514_vm6, %v428_v50  ;;  %1517 = vmatmul.msk.bf16.vlgmr.msra.gmra.mxu2 %vm514_vm6, %v428_v50  ;;  %v486_v7 = vrot.slane %v484_v4, 1  ;;  %v481_v10 = vrot.slane %v479_v9, 1  ;;  %v487_v14 = vrot.slane %v484_v4, 2  ;;  %v606_v15 = vperm.slane %v484_v4, 0 }
 0x15d   : > { %1526 = vmatmul.msk.bf16.vlgmr.msra.gmra.mxu3 %vm514_vm6, %v428_v50  ;;  %632 = vmatpush.bf16.msrb.mxu0 %v1688_v53  ;;  %v488_v17 = vrot.slane %v484_v4, 3  ;;  %v494_v21 = vperm.slane %v479_v9, 0  ;;  %v482_v27 = vrot.slane %v479_v9, 2  ;;  %v483_v30 = vrot.slane %v479_v9, 3 }
 0x15e   : > { %1499 = vmatmul.msk.bf16.vlgmr.msra.gmra.mxu0 %vm514_vm6, %v428_v50  ;;  %707 = vmatpush.bf16.msrb.mxu3 %v1694_v51  ;;  %v607_v11 = vperm.slane %v486_v7, 0  ;;  %v495_v18 = vperm.slane %v481_v10, 0  ;;  %v608_v23 = vperm.slane %v487_v14, 0 }
 0x15f   : > { %658 = vmatpush.bf16.msrb.mxu1 %v1689_v52  ;;  %683 = vmatpush.bf16.msrb.mxu2 %v1691_v54  ;;  %v609_v25 = vperm.slane %v488_v17, 0  ;;  %v496_v39 = vperm.slane %v482_v27, 0  ;;  %v497_v41 = vperm.slane %v483_v30, 0  ;;  %v489_v54 = vld [vmem:[%s2081_s14 + $0x8] sm:$0xf] }
 0x161   : > { %633 = vmatpush.bf16.msrb.mxu0 %v1687_v55  ;;  %v491_v55 = vrot.slane %v489_v54, 1 }
 0x162   : > { %708 = vmatpush.bf16.msrb.mxu3 %v1693_v56 }
 0x163   : > { %790 = vmatpush.bf16.msra.mxu2 %v1700_v57  ;;  %765 = vmatpush.bf16.msra.mxu1 %v1698_v58  ;;  %v715_v56 = vperm.slane %v491_v55, 0  ;;  %v492_v57 = vrot.slane %v489_v54, 2 }
 0x165   : > { %740 = vmatpush.bf16.msra.mxu0 %v1696_v62 }
 0x166   : > { %815 = vmatpush.bf16.msra.mxu3 %v1702_v61 }
 0x167   : > { %791 = vmatpush.bf16.msra.mxu2 %v1699_v59  ;;  %766 = vmatpush.bf16.msra.mxu1 %v1697_v60  ;;  %v716_v60 = vperm.slane %v492_v57, 0 }
 0x169   : > { %741 = vmatpush.bf16.msra.mxu0 %v1695_v0  ;;  %v714_v0 = vperm.slane %v489_v54, 0 }
 0x16a   : > { %816 = vmatpush.bf16.msra.mxu3 %v1701_v63 }
 0x16c   : > { %1544 = vmatmul.msk.bf16.vlgmr.msrb.gmra.mxu1 %vm514_vm6, %v428_v50  ;;  %1553 = vmatmul.msk.bf16.vlgmr.msrb.gmra.mxu2 %vm514_vm6, %v428_v50 }
 0x16d   : > { %1562 = vmatmul.msk.bf16.vlgmr.msrb.gmra.mxu3 %vm514_vm6, %v428_v50 }
 0x16e   : > { %1535 = vmatmul.msk.bf16.vlgmr.msrb.gmra.mxu0 %vm514_vm6, %v428_v50 }
 0x17c   : > { %1589 = vmatmul.msk.bf16.vlgmr.msra.gmra.mxu2 %vm514_vm6, %v428_v50  ;;  %1580 = vmatmul.msk.bf16.vlgmr.msra.gmra.mxu1 %vm514_vm6, %v428_v50 }
 0x17d   : > { %1598 = vmatmul.msk.bf16.vlgmr.msra.gmra.mxu3 %vm514_vm6, %v428_v50 }
 0x17e   : > { %1571 = vmatmul.msk.bf16.vlgmr.msra.gmra.mxu0 %vm514_vm6, %v428_v50 }
 0x1d9   : > { %v552_v1 = vpop.f32.mrf.mxu1 }
 0x1da   : > { %v553_v26 = vadd.f32 %v552_v1, %v495_v18  ;;  %v425_v18 = vld [vmem:[%s424_s21] sm:$0x1] }
 0x1db   : > { %v527_v2 = vpop.f32.mrf.mxu0 }
 0x1dc   : > { %v528_v32 = vadd.f32 %v527_v2, %v494_v21  ;;  %v823_v38 = vpack.c.bf16 %v553_v26, %v553_v26  ;;  %v493_v2 = vrot.slane %v489_v54, 3 }
 0x1de   : > { %v822_v45 = vpack.c.bf16 %v528_v32, %v528_v32 }
 0x1df   : > { %v577_v3 = vpop.f32.mrf.mxu2 }
 0x1e0   : > { %v602_v5 = vpop.f32.mrf.mxu3  ;;  %v578_v48 = vadd.f32 %v577_v3, %v496_v39 }
 0x1e1   : > { %v554_v6 = vpop.f32.mrf.mxu1  ;;  %v603_v49 = vadd.f32 %v602_v5, %v497_v41 }
 0x1e2   : > { %v824_v52 = vpack.c.bf16 %v578_v48, %v578_v48 }
 0x1e3   : > { %v529_v8 = vpop.f32.mrf.mxu0  ;;  %v825_v53 = vpack.c.bf16 %v603_v49, %v603_v49 }
 0x1e4   : > { %v717_v8 = vperm.slane %v493_v2, 0 }
 0x1e7   : > { %v579_v12 = vpop.f32.mrf.mxu2 }
 0x1e8   : > { %v604_v13 = vpop.f32.mrf.mxu3 }
 0x1e9   : > { %v660_v16 = vpop.f32.mrf.mxu1 }
 0x1ea   : > { %v661_v19 = vadd.f32 %v660_v16, %v607_v11 }
 0x1eb   : > { %v635_v20 = vpop.f32.mrf.mxu0 }
 0x1ec   : > { %v827_v22 = vpack.c.bf16 %v661_v19, %v661_v19  ;;  %v636_v24 = vadd.f32 %v635_v20, %v606_v15  ;;  %v426_v19 = vsub.f32 1.0, %v425_v18 }
 0x1ee   : > { %v855_v28 = vsel %vm831_vm7, %v827_v22, 0  ;;  %v826_v29 = vpack.c.bf16 %v636_v24, %v636_v24  ;;  %v427_v20 = vmul.f32 -1e+09, %v426_v19  ;;  %v1704_v19 = vld [vmem:[%s2076_s23 + $0x8] sm:$0xff] }
 0x1ef   : > { %v685_v31 = vpop.f32.mrf.mxu2  ;;  %864 = vmatpush.bf16.xpose.msrb.mxu1 %v855_v28 }
 0x1f0   : > { %v686_v33 = vadd.f32 %v685_v31, %v608_v23  ;;  %v710_v34 = vpop.f32.mrf.mxu3  ;;  %v836_v35 = vsel %vm831_vm7, %v826_v29, 0  ;;  %v830_v21 = vperm.slane %v427_v20, 0  ;;  %v1703_v20 = vld [vmem:[%s2076_s23] sm:$0xff] }
 0x1f1   : > { %v711_v36 = vadd.f32 %v710_v34, %v609_v25  ;;  %845 = vmatpush.bf16.xpose.msrb.mxu0 %v836_v35  ;;  %v662_v37 = vpop.f32.mrf.mxu1 }
 0x1f2   : > { %v828_v40 = vpack.c.bf16 %v686_v33, %v686_v33 }
 0x1f3   : > { %v829_v42 = vpack.c.bf16 %v711_v36, %v711_v36  ;;  %v637_v43 = vpop.f32.mrf.mxu0 }
 0x1f4   : > { %v874_v46 = vsel %vm831_vm7, %v828_v40, 0 }
 0x1f5   : > { %v893_v47 = vsel %vm831_vm7, %v829_v42, 0  ;;  %883 = vmatpush.bf16.xpose.msrb.mxu2 %v874_v46 }
 0x1f6   : > { %902 = vmatpush.bf16.xpose.msrb.mxu3 %v893_v47  ;;  %1600 = vmatmul.msk.bf16.vlgmr.msrb.gmra.mxu1 %vm831_vm7, %v823_v38 }
 0x1f7   : > { %v687_v50 = vpop.f32.mrf.mxu2 }
 0x1f8   : > { %v712_v51 = vpop.f32.mrf.mxu3  ;;  %1599 = vmatmul.msk.bf16.vlgmr.msrb.gmra.mxu0 %vm831_vm7, %v822_v45 }
 0x1f9   : > { %v768_v58 = vpop.f32.mrf.mxu1 }
 0x1fa   : > { %v769_v59 = vadd.f32 %v768_v58, %v715_v56 }
 0x1fb   : > { %v743_v4 = vpop.f32.mrf.mxu0 }
 0x1fc   : > { %1601 = vmatmul.msk.bf16.vlgmr.msrb.gmra.mxu2 %vm831_vm7, %v824_v52  ;;  %v957_v61 = vpack.c.bf16 %v769_v59, %v769_v59  ;;  %v744_v6 = vadd.f32 %v743_v4, %v714_v0 }
 0x1fd   : > { %1602 = vmatmul.msk.bf16.vlgmr.msrb.gmra.mxu3 %vm831_vm7, %v825_v53 }
 0x1fe   : > { %v984_v63 = vsel %vm963_vm8, %v957_v61, 0  ;;  %v956_v9 = vpack.c.bf16 %v744_v6, %v744_v6 }
 0x1ff   : > { %v793_v62 = vpop.f32.mrf.mxu2  ;;  %993 = vmatpush.bf16.msra.mxu1 %v984_v63 }
 0x200   : > { %v794_v1 = vadd.f32 %v793_v62, %v716_v60  ;;  %v818_v10 = vpop.f32.mrf.mxu3  ;;  %v965_v12 = vsel %vm963_vm8, %v956_v9, 0 }
 0x201   : > { %v770_v5 = vpop.f32.mrf.mxu1  ;;  %v819_v13 = vadd.f32 %v818_v10, %v717_v8  ;;  %974 = vmatpush.bf16.msra.mxu0 %v965_v12 }
 0x202   : > { %v958_v3 = vpack.c.bf16 %v794_v1, %v794_v1 }
 0x203   : > { %v959_v14 = vpack.c.bf16 %v819_v13, %v819_v13  ;;  %v745_v15 = vpop.f32.mrf.mxu0 }
 0x204   : > { %v1003_v7 = vsel %vm963_vm8, %v958_v3, 0 }
 0x205   : > { %1012 = vmatpush.bf16.msra.mxu2 %v1003_v7  ;;  %v1022_v16 = vsel %vm963_vm8, %v959_v14, 0  ;;  %1082 = vmatpush.bf16.msrb.mxu0 %v1704_v19 }
 0x206   : > { %1031 = vmatpush.bf16.msra.mxu3 %v1022_v16 }
 0x207   : > { %v795_v11 = vpop.f32.mrf.mxu2 }
 0x208   : > { %v820_v17 = vpop.f32.mrf.mxu3 }
 0x209   : > { %1083 = vmatpush.bf16.msrb.mxu0 %v1703_v20 }
 0x273   : > { %v866_v22 = vpop.f32.mrf.mxu1 }
 0x274   : > { %v867_v23 = vadd.f32 %v866_v22, %v830_v21 }
 0x275   : > { %v847_v24 = vpop.f32.mrf.mxu0 }
 0x276   : > { %v911_v25 = vsel %vm831_vm7, %v867_v23, -inf  ;;  %v848_v26 = vadd.f32 %v847_v24, %v830_v21 }
 0x277   : > { %912 = vmax.xlane.f32.xlu1 %v911_v25 }
 0x278   : > { %v908_v28 = vsel %vm831_vm7, %v848_v26, -inf }
 0x27b   : > { %v868_v27 = vpop.f32.mrf.mxu1 }
 0x27d   : > { %v849_v29 = vpop.f32.mrf.mxu0 }
 0x27f   : > { %v885_v30 = vpop.f32.mrf.mxu2  ;;  %909 = vmax.xlane.f32.xlu1 %v908_v28  ;;  %v1801_v28 = vld [vmem:[%s2081_s14 + $0xc] ss:$0 sm:$0xff] }
 0x280   : > { %v886_v31 = vadd.f32 %v885_v30, %v830_v21  ;;  %v904_v32 = vpop.f32.mrf.mxu3 }
 0x281   : > { %v905_v34 = vadd.f32 %v904_v32, %v830_v21 }
 0x282   : > { %v914_v33 = vsel %vm831_vm7, %v886_v31, -inf }
 0x283   : > { %915 = vmax.xlane.f32.xlu0 %v914_v33  ;;  %v917_v37 = vsel %vm831_vm7, %v905_v34, -inf }
 0x287   : > { %v887_v35 = vpop.f32.mrf.mxu2 }
 0x288   : > { %v906_v36 = vpop.f32.mrf.mxu3 }
 0x28b   : > { %918 = vmax.xlane.f32.xlu0 %v917_v37 }
 0x2ea   : > { %v913_v38 = vpop.xlane.xlu1 %912 }
 0x2eb   : > { %v921_v39 = vsub.f32 %v867_v23, %v913_v38 }
 0x2ed   : > { %v926_v40 = vmul.f32 1.442695, %v921_v39 }
 0x2ef   : > { %1808 = vpow2.f32 %v926_v40 }
 0x2f2   : > { %v910_v41 = vpop.xlane.xlu1 %909 }
 0x2f3   : > { %v920_v42 = vsub.f32 %v848_v26, %v910_v41 }
 0x2f5   : > { %v1809_v43 = vpop.eup %1808  ;;  %v924_v45 = vmul.f32 1.442695, %v920_v42 }
 0x2f6   : > { %v916_v46 = vpop.xlane.xlu0 %915  ;;  %v935_v47 = vsel %vm831_vm7, %v1809_v43, 0.0 }
 0x2f7   : > { %1810 = vpow2.f32 %v924_v45  ;;  %v922_v48 = vsub.f32 %v886_v31, %v916_v46  ;;  %936 = vadd.xlane.f32.xlu0 %v935_v47  ;;  %v1706_v46 = vld [vmem:[%s2076_s23 + $0x28] sm:$0xff]  ;;  %v1705_v47 = vld [vmem:[%s2076_s23 + $0x20] sm:$0xff] }
 0x2f8   : > { %1163 = vmatpush.bf16.msrb.mxu1 %v1706_v46 }
 0x2f9   : > { %v928_v49 = vmul.f32 1.442695, %v922_v48 }
 0x2fb   : > { %1812 = vpow2.f32 %v928_v49 }
 0x2fc   : > { %1164 = vmatpush.bf16.msrb.mxu1 %v1705_v47 }
 0x2fd   : > { %v1811_v50 = vpop.eup %1810 }
 0x2fe   : > { %v919_v51 = vpop.xlane.xlu0 %918  ;;  %v932_v52 = vsel %vm831_vm7, %v1811_v50, 0.0 }
 0x2ff   : > { %v923_v53 = vsub.f32 %v905_v34, %v919_v51  ;;  %933 = vadd.xlane.f32.xlu1 %v932_v52  ;;  %v1947_v34 = vmov 32.0  }
 0x301   : > { %v1813_v54 = vpop.eup %1812  ;;  %v930_v55 = vmul.f32 1.442695, %v923_v53 }
 0x302   : > { %v938_v56 = vsel %vm831_vm7, %v1813_v54, 0.0 }
 0x303   : > { %1814 = vpow2.f32 %v930_v55  ;;  %939 = vadd.xlane.f32.xlu2 %v938_v56 }
 0x309   : > { %v1815_v57 = vpop.eup %1814 }
 0x30a   : > { %v941_v58 = vsel %vm831_vm7, %v1815_v57, 0.0 }
 0x30b   : > { %942 = vadd.xlane.f32.xlu2 %v941_v58 }
 0x36a   : > { %v937_v59 = vpop.xlane.xlu0 %936 }
 0x36b   : > { %1816 = vrcp.f32 %v937_v59  ;;  %v1803_v59 = vld [vmem:[%s2081_s14 + $0x10] ss:$0 sm:$0xff] }
 0x371   : > { %v1817_v60 = vpop.eup %1816 }
 0x372   : > { %v949_v61 = vmul.f32 %v1817_v60, %v1809_v43  ;;  %v934_v62 = vpop.xlane.xlu1 %933 }
 0x373   : > { %1818 = vrcp.f32 %v934_v62 }
 0x374   : > { %v953_v63 = vpack.c.bf16 %v949_v61, %v949_v61 }
 0x376   : > { %v940_v0 = vpop.xlane.xlu2 %939  ;;  %1604 = vmatmul.msk.bf16.vlgmr.msra.gmra.mxu1 %vm831_vm7, %v953_v63 }
 0x377   : > { %1820 = vrcp.f32 %v940_v0  ;;  %v1710_v0 = vld [vmem:[%s2076_s23 + $0x58] sm:$0xff] }
 0x378   : > { %1214 = vmatpush.bf16.msrb.mxu2 %v1710_v0 }
 0x379   : > { %v1819_v1 = vpop.eup %1818 }
 0x37a   : > { %v948_v2 = vmul.f32 %v1819_v1, %v1811_v50  ;;  %v1709_v1 = vld [vmem:[%s2076_s23 + $0x50] sm:$0xff] }
 0x37c   : > { %v952_v3 = vpack.c.bf16 %v948_v2, %v948_v2  ;;  %1215 = vmatpush.bf16.msrb.mxu2 %v1709_v1  ;;  %v1708_v2 = vld [vmem:[%s2076_s23 + $0x48] sm:$0xff] }
 0x37d   : > { %v1821_v4 = vpop.eup %1820 }
 0x37e   : > { %v950_v5 = vmul.f32 %v1821_v4, %v1813_v54  ;;  %v943_v6 = vpop.xlane.xlu2 %942  ;;  %1603 = vmatmul.msk.bf16.vlgmr.msra.gmra.mxu0 %vm831_vm7, %v952_v3  ;;  %v1707_v3 = vld [vmem:[%s2076_s23 + $0x40] sm:$0xff]  ;;  %v1804_v4 = vld [vmem:[%s2081_s14 + $0xd] ss:$0 sm:$0xff] }
 0x37f   : > { %1822 = vrcp.f32 %v943_v6 }
 0x380   : > { %v954_v7 = vpack.c.bf16 %v950_v5, %v950_v5  ;;  %1824 = vrcp.f32 %v1947_v34  ;;  %1216 = vmatpush.bf16.msrb.mxu2 %v1708_v2 }
 0x382   : > { %1605 = vmatmul.msk.bf16.vlgmr.msra.gmra.mxu2 %vm831_vm7, %v954_v7 }
 0x384   : > { %1217 = vmatpush.bf16.msrb.mxu2 %v1707_v3 }
 0x385   : > { %v1823_v8 = vpop.eup %1822 }
 0x386   : > { %v951_v9 = vmul.f32 %v1823_v8, %v1815_v57  ;;  %v1825_v35 = vpop.eup %1824  ;;  %v1802_v57 = vld [vmem:[%s2081_s14 + $0xf] ss:$0 sm:$0xff] }
 0x387   : > { %v1096_v36 = vmul.f32 32.0, %v1825_v35  ;;  %vm1100_vm11 = vweird.f32 %v1825_v35 }
 0x388   : > { %v955_v10 = vpack.c.bf16 %v951_v9, %v951_v9 }
 0x389   : > { %v1097_v37 = vsub.f32 1.0, %v1096_v36 }
 0x38a   : > { %1606 = vmatmul.msk.bf16.vlgmr.msra.gmra.mxu3 %vm831_vm7, %v955_v10 }
 0x38b   : > { %v1098_v38 = vmul.f32 %v1825_v35, %v1097_v37 }
 0x38d   : > { %v1099_v39 = vadd.f32 %v1825_v35, %v1098_v38  ;;  %v1806_v38 = vld [vmem:[%s2081_s14 + $0x11] ss:$0 sm:$0xff] }
 0x38f   : > { %v2211_v40 = vsel %vm1100_vm11, %v1825_v35, %v1099_v39 }
 0x3f3   : > { %v995_v11 = vpop.f32.mrf.mxu1 }
 0x3f4   : > { %1038 = vrot.lane.b32.xlu2 %v995_v11, %s1944_s15 }
 0x3fb   : > { %v976_v12 = vpop.f32.mrf.mxu0  ;;  %v997_v13 = vpop.f32.mrf.mxu1 }
 0x403   : > { %v978_v14 = vpop.f32.mrf.mxu0 }
 0x405   : > { %v1014_v15 = vpop.f32.mrf.mxu2 }
 0x406   : > { %1042 = vrot.lane.b32.xlu0 %v1014_v15, %s1945_s20 }
 0x40d   : > { %v1016_v16 = vpop.f32.mrf.mxu2  ;;  %v1033_v17 = vpop.f32.mrf.mxu3 }
 0x40e   : > { %1046 = vrot.lane.b32.xlu1 %v1033_v17, %s1946_s27 }
 0x415   : > { %v1035_v18 = vpop.f32.mrf.mxu3 }
 0x416   : > { %v1805_v18 = vld [vmem:[%s2081_s14 + $0xe] ss:$0 sm:$0xff] }
 0x44e   : > { %v1039_v21 = vpop.permute.xlu2 %1038 }
 0x44f   : > { %v1049_v23 = vsel %vm831_vm7, %v976_v12, %v1039_v21 }
 0x478   : > { %v1043_v22 = vpop.permute.xlu0 %1042 }
 0x479   : > { %v1051_v24 = vsel %vm1050_vm9, %v1049_v23, %v1043_v22 }
 0x480   : > { %v1047_v25 = vpop.permute.xlu1 %1046 }
 0x481   : > { %v1053_v26 = vsel %vm1052_vm10, %v1051_v24, %v1047_v25 }
 0x482   : > { %v1058_v27 = vpack.c.bf16 %v1053_v26, %v1053_v26 }
 0x484   : > { %1615 = vmatmul.msk.bf16.vlgmr.msrb.gmra.mxu0 %vm514_vm6, %v1058_v27 }
 0x501   : > { %v1085_v29 = vpop.f32.mrf.mxu0 }
 0x502   : > { %v1086_v30 = vadd.f32 %v1801_v28, %v1085_v29 }
 0x504   : > { %v1089_v31 = vadd.f32 %v1086_v30, %v2138_v44 }
 0x506   : > { %v1092_v32 = vsel %vm514_vm6, %v1089_v31, 0.0 }
 0x507   : > { %1093 = vadd.xlane.f32.xlu2 %v1092_v32 }
 0x509   : > { %v1087_v33 = vpop.f32.mrf.mxu0 }
 0x57a   : > { %v1094_v41 = vpop.xlane.xlu2 %1093 }
 0x57b   : > { %v1102_v42 = vmul.f32 %v2211_v40, %v1094_v41  ;;  %v1807_v41 = vld [vmem:[%s2081_s14 + $0x12] ss:$0 sm:$0xff] }
 0x57d   : > { %v1103_v44 = vsub.f32 %v1089_v31, %v1102_v42 }
 0x57f   : > { %v1104_v43 = vmul.f32 %v1103_v44, %v1103_v44 }
 0x581   : > { %v1105_v45 = vsel %vm514_vm6, %v1104_v43, 0.0 }
 0x582   : > { %1106 = vadd.xlane.f32.xlu0 %v1105_v45 }
 0x5f5   : > { %v1107_v48 = vpop.xlane.xlu0 %1106 }
 0x5f6   : > { %v1108_v49 = vmul.f32 %v1107_v48, %v2211_v40 }
 0x5f8   : > { %v1109_v50 = vadd.f32 1e-05, %v1108_v49 }
 0x5fa   : > { %1826 = vrsqrt.f32 %v1109_v50  ;;  %vm1116_vm13 = vweird.f32 %v1109_v50 }
 0x600   : > { %v1827_v51 = vpop.eup %1826 }
 0x601   : > { %v1111_v52 = vmul.f32 %v1827_v51, %v1109_v50  ;;  %vm1117_vm12 = vweird.f32 %v1827_v51 }
 0x602   : > { %vm1118_vm14 = vmor %vm1116_vm13, %vm1117_vm12 }
 0x603   : > { %v1112_v53 = vmul.f32 %v1827_v51, %v1111_v52 }
 0x605   : > { %v1113_v54 = vmul.f32 0.5, %v1112_v53 }
 0x607   : > { %v1114_v55 = vsub.f32 1.5, %v1113_v54 }
 0x609   : > { %v1115_v56 = vmul.f32 %v1827_v51, %v1114_v55 }
 0x60b   : > { %v1119_v58 = vsel %vm1118_vm14, %v1827_v51, %v1115_v56 }
 0x60c   : > { %v1120_v60 = vmul.f32 %v1119_v58, %v1103_v44 }
 0x60e   : > { %v1122_v61 = vmul.f32 %v1802_v57, %v1120_v60 }
 0x610   : > { %v1124_v62 = vadd.f32 %v1803_v59, %v1122_v61 }
 0x612   : > { %v1139_v63 = vpack.c.bf16 %v1124_v62, %v1124_v62 }
 0x614   : > { %1636 = vmatmul.msk.bf16.vlgmr.msrb.gmra.mxu1 %vm514_vm6, %v1139_v63 }
 0x691   : > { %v1166_v5 = vpop.f32.mrf.mxu1 }
 0x692   : > { %v1167_v6 = vadd.f32 %v1804_v4, %v1166_v5 }
 0x694   : > { %v1170_v7 = vmul.f32 %v1167_v6, %v1167_v6 }
 0x696   : > { %v1171_v8 = vmul.f32 %v1170_v7, %v1167_v6 }
 0x698   : > { %v1172_v9 = vmul.f32 0.044715, %v1171_v8 }
 0x699   : > { %v1168_v10 = vpop.f32.mrf.mxu1 }
 0x69a   : > { %v1173_v11 = vadd.f32 %v1172_v9, %v1167_v6 }
 0x69c   : > { %v1174_v12 = vmul.f32 0.7978846, %v1173_v11 }
 0x69e   : > { %1828 = vtanh.f32 %v1174_v12 }
 0x6a4   : > { %v1829_v13 = vpop.eup %1828 }
 0x6a5   : > { %v1176_v14 = vadd.f32 1.0, %v1829_v13 }
 0x6a7   : > { %v1177_v15 = vmul.f32 0.5, %v1176_v14 }
 0x6a9   : > { %v1178_v16 = vmul.f32 %v1177_v15, %v1167_v6 }
 0x6ab   : > { %v1179_v17 = vpack.c.bf16 %v1178_v16, %v1178_v16 }
 0x6ad   : > { %1653 = vmatmul.msk.bf16.vlgmr.msrb.gmra.mxu2 %vm1206_vm15, %v1179_v17 }
 0x730   : > { %v1219_v19 = vpop.f32.mrf.mxu2 }
 0x731   : > { %v1220_v20 = vadd.f32 %v1805_v18, %v1219_v19 }
 0x733   : > { %v1223_v21 = vadd.f32 %v1220_v20, %v1124_v62 }
 0x735   : > { %v1226_v22 = vsel %vm514_vm6, %v1223_v21, 0.0 }
 0x736   : > { %1227 = vadd.xlane.f32.xlu1 %v1226_v22 }
 0x738   : > { %v1221_v23 = vpop.f32.mrf.mxu2 }
 0x7a9   : > { %v1228_v24 = vpop.xlane.xlu1 %1227 }
 0x7aa   : > { %v1229_v25 = vmul.f32 %v1228_v24, %v2211_v40 }
 0x7ac   : > { %v1230_v26 = vsub.f32 %v1223_v21, %v1229_v25 }
 0x7ae   : > { %v1231_v27 = vmul.f32 %v1230_v26, %v1230_v26 }
 0x7b0   : > { %v1232_v28 = vsel %vm514_vm6, %v1231_v27, 0.0 }
 0x7b1   : > { %1233 = vadd.xlane.f32.xlu2 %v1232_v28 }
 0x824   : > { %v1234_v29 = vpop.xlane.xlu2 %1233 }
 0x825   : > { %v1235_v30 = vmul.f32 %v1234_v29, %v2211_v40 }
 0x827   : > { %v1236_v31 = vadd.f32 1e-05, %v1235_v30 }
 0x829   : > { %1830 = vrsqrt.f32 %v1236_v31  ;;  %vm1243_vm1 = vweird.f32 %v1236_v31 }
 0x82f   : > { %v1831_v32 = vpop.eup %1830 }
 0x830   : > { %v1238_v33 = vmul.f32 %v1831_v32, %v1236_v31  ;;  %vm1244_vm0 = vweird.f32 %v1831_v32 }
 0x831   : > { %vm1245_vm2 = vmor %vm1243_vm1, %vm1244_vm0 }
 0x832   : > { %v1239_v34 = vmul.f32 %v1831_v32, %v1238_v33 }
 0x834   : > { %v1240_v35 = vmul.f32 0.5, %v1239_v34 }
 0x836   : > { %v1241_v36 = vsub.f32 1.5, %v1240_v35 }
 0x838   : > { %v1242_v37 = vmul.f32 %v1831_v32, %v1241_v36 }
 0x83a   : > { %v1246_v39 = vsel %vm1245_vm2, %v1831_v32, %v1242_v37 }
 0x83b   : > { %v1247_v42 = vmul.f32 %v1246_v39, %v1230_v26 }
 0x83d   : > { %v1249_v44 = vmul.f32 %v1806_v38, %v1247_v42  ;;  %1256 = sbr.rel (%p1654_p0) target bundleno = 2397 (0x95d), region = 56 }
 0x83f   : > { %v1251_v43 = vadd.f32 %v1807_v41, %v1249_v44 }
 0x841   : > { %1252 = vst.msk [vmem:[#allocation2] sm:$0xff] %vm514_vm6, %v1251_v43 }
 0x842   : > { %v1712_v40 = vld [vmem:[%s2309_s7 + $0x8] sm:$0xff]  ;;  %v1257_v45 = vsel %vm514_vm6, %v1251_v43, 0.0  ;;  %v1711_v47 = vld [vmem:[%s2309_s7] sm:$0xff]  ;;  %v1714_v55 = vld [vmem:[%s2309_s7 + $0x18] sm:$0xff]  ;;  %vm1335_vm3 = vcmask 57344  }
 0x843   : > { %v1258_v46 = vrot.slane %v1257_v45, 4  ;;  %1297 = vmatpush.bf16.msra.mxu0 %v1712_v40  ;;  %1328 = vmatpush.bf16.msra.mxu1 %v1714_v55  ;;  %v1713_v56 = vld [vmem:[%s2309_s7 + $0x10] sm:$0xff]  ;;  %v1275_v57 = vld [vmem:[%s2308_s6 + $0x2] sm:$0x1]  ;;  %v1306_v63 = vld [vmem:[%s2308_s6 + $0x3] sm:$0x1] }
 0x845   : > { %v1259_v48 = vadd.f32 %v1258_v46, %v1257_v45 }
 0x847   : > { %v1260_v49 = vrot.slane %v1259_v48, 2  ;;  %1298 = vmatpush.bf16.msra.mxu0 %v1711_v47  ;;  %1329 = vmatpush.bf16.msra.mxu1 %v1713_v56 }
 0x849   : > { %v1261_v50 = vadd.f32 %v1260_v49, %v1259_v48 }
 0x84b   : > { %v1262_v51 = vrot.slane %v1261_v50, 1 }
 0x84d   : > { %v1263_v52 = vadd.f32 %v1262_v51, %v1261_v50 }
 0x84f   : > { %v1264_v53 = vmul.f32 0.125, %v1263_v52 }
 0x851   : > { %v1274_v54 = vpack.c.bf16 %v1264_v53, %v1264_v53 }
 0x853   : > { %1667 = vmatmul.msk.bf16.vlgmr.msra.gmra.mxu0 %vm514_vm6, %v1274_v54 }
 0x8d0   : > { %v1300_v58 = vpop.f32.mrf.mxu0 }
 0x8d1   : > { %v1301_v59 = vadd.f32 %v1300_v58, %v1275_v57 }
 0x8d3   : > { %v1304_v60 = vmax.f32 %v1301_v59, 0.0 }
 0x8d5   : > { %v1305_v61 = vpack.c.bf16 %v1304_v60, %v1304_v60 }
 0x8d7   : > { %1676 = vmatmul.msk.bf16.vlgmr.msra.gmra.mxu1 %vm514_vm6, %v1305_v61 }
 0x8d8   : > { %v1302_v62 = vpop.f32.mrf.mxu0 }
 0x954   : > { %v1331_v0 = vpop.f32.mrf.mxu1 }
 0x955   : > { %v1332_v1 = vadd.f32 %v1331_v0, %v1306_v63 }
 0x957   : > { %1336 = vst.msk [vmem:[%s2085_s24] sm:$0x1] %vm1335_vm3, %v1332_v1 }
 0x95c   : > { %v1333_v2 = vpop.f32.mrf.mxu1 }
 0x95d PF: > { %s2342_s9 = sld [smem:[#allocation10_spill]]  ;;  %s1346_s0 = scalar_lea.hbm %s2310_s8, %s1928_s13 }
 0x95e   : > { %s1348_s5 = sshll.u32 %s2085_s24, 4  ;;  %s1350_s16 = sshll.u32 %s1346_s0, 4  ;;  %s1349_s5 = int_to_ptr.vmem [resolvable:$true] %s1348_s5  ;;  %s1351_s16 = int_to_ptr.hbm [resolvable:$true] %s1350_s16 }
 0x95f   : > { %s1858_s15 = sshra.s32 %s1351_s16, 4  ;;  %s1864_s29 = scalar_lea.hbm %s2310_s8, 2  ;;  %s1859_s15 = int_to_ptr.hbm [resolvable:$true] %s1858_s15 }
 0x960   : > { %s1860_s20 = scalar_lea.hbm %s1859_s15, 1  ;;  %p1865_p5 = scmp.lt.s32.totalorder %s1859_s15, %s2310_s8 }
 0x961   : > { %p1861_p1 = scmp.ne.s32.totalorder %s1859_s15, %s1860_s20  ;;  %p1866_p6 = scmp.lt.s32.totalorder %s1864_s29, %s1860_s20 }
 0x963   : > { %s2344_s25 = sand.u32 1, %s2342_s9   ;;  %p1862_p2 = pnand %p1861_p1, %p2045_p3 }
 0x964   : > { %s1338_s21 = scalar_lea.sflag [#allocation6], %s2344_s25  ;;  %p1867_p7 = por %p1866_p6, %p1865_p5 }
 0x965   : > { %p1863_p4 = pneg %p1862_p2 }
 0x967   : > { %p1868_p8 = pnand %p1867_p7, %p1863_p4 }
 0x969   : > { %1871 = shalt.err (!%p1868_p8)
}
 0x96a   : > { %1718 = dma.vmem_to_hbm [thread:$0]  (%p2045_p3), %s1349_s5, 16, %s1351_s16, %s1338_s21  }
 0x96b PF: > { %s2345_s13 = sld [smem:[#allocation14_spill]] }
 0x96c   : > { %s2346_s24 = sld [smem:[#allocation9_spill]] }
 0x971   : > { %p1724_p10 = scmp.ge.s32.totalorder %s2345_s13, 2 }
 0x972   : > { %s1362_s14 = sand.u32 1, %s2346_s24  }
 0x973   : > { %p1721_p11 = pnand %p1724_p10, %p2055_p9  ;;  %s1363_s19 = scalar_lea.sflag [#allocation6], %s1362_s14 }
 0x975   : > { %p1722_p12 = pneg %p1721_p11 }
 0x977   : > { %1907 = dma.done.wait (%p1722_p12), %s1363_s19, 16  }
 0x978   : > { %1909 = vsyncadd (%p1722_p12), %s1363_s19, 4294967280  ;;  %s29_s15 = sadd.s32 1, %s2345_s13   ;;  %s2348_s9 = sld [smem:[#allocation10_spill]] }
 0x979   : > { %p26_p13 = scmp.ge.s32.totalorder %s29_s15, 6   ;;  %s2349_s10 = sld [smem:[#allocation11_spill]] }
 0x97a   : > { %s2350_s11 = sld [smem:[#allocation19_spill]] }
 0x97b   : > { %s2351_s12 = sld [smem:[#allocation12_spill]]  ;;  %28 = sbr.rel (!%p26_p13) target bundleno = 13 (0xd), region = 111 }
 0x97c   : > { %s2352_s13 = sld [smem:[#allocation13_spill]] }
 0x97d   : > { %s2353_s14 = sld [smem:[#allocation15_spill]] }
 0x97e   : > { %s2354_s0 = sld [smem:[#allocation17_spill]] }
 0x980   :  { %1368 = vsyncpa [#allocation6], 1 }
 0x981   :  { %1370 = vsyncpa [#allocation6 + $0x1], 1 }

</bundles_post_ra>
